<compile_context>
chip_gen: v7x
topology: tpu7x:2x2x1
jax: 0.10.0
libtpu: 0.0.40
codegen_flags: <defaults>
</compile_context>

<pallas_src>
import math
from collections import OrderedDict
from functools import partial

import jax
import jax.numpy as jnp
from jax import lax
from jax.experimental import pallas as pl
from jax.experimental.pallas import tpu as pltpu

# ----------------------------- config -------------------------------------
VOCAB = 64
MAX_POS = 8
D_MODEL = 32
N_HEAD = 4
N_LAYER = 2
D_HEAD = D_MODEL // N_HEAD
D_FF = 4 * D_MODEL                      # = 128, exactly one lane tile

_SQRT_2_OVER_PI = math.sqrt(2.0 / math.pi)
_MASK_VALUE = -1e30

# ----------------------- packed-blob row offsets ---------------------------
# per-layer blob: (N_LAYER, _LAYER_ROWS, 128) f32
_R_WQKV = 0        # rows   0: 32, cols 0:96  -> [Wq | Wk | Wv] (cols 96:128 = 0)
_R_W1   = 32       # rows  32: 64, cols 0:128 -> W1
_R_W2   = 64       # rows  64:192, cols 0:32  -> W2
_R_WO   = 192      # rows 192:224, cols 0:32  -> Wo
_R_LN   = 224      # row 224: [ln1_g | ln1_b | ln2_g | ln2_b]
_R_BIAS = 225      # row 225: [bo | b2 | 0...]
_R_B1   = 226      # row 226: b1
_LAYER_ROWS = 232  # padded to a multiple of 8

# head blob: (_HEAD_ROWS, 128) f32
_R_WTE = 0         # rows 0:32, cols 0:64 -> wte^T (cols 64:128 = 0 -> padded logits)
_R_LNF = 32        # row 32: [lnf_g | lnf_b | 0...]
_HEAD_ROWS = 40


# --------------------------- in-kernel helpers ------------------------------

def _layernorm(x, g, b):
    """f32 LayerNorm over the feature (lane) dim; g/b are (1, D) row vectors."""
    mu = jnp.mean(x, axis=-1, keepdims=True)
    xc = x - mu
    var = jnp.mean(xc * xc, axis=-1, keepdims=True)
    return xc * lax.rsqrt(var + 1e-5) * g + b


def _gelu_new(x):
    # GPT-Neo uses the "gelu_new" (tanh) approximation; kept in f32 (EUP tanh).
    return 0.5 * x * (1.0 + jnp.tanh(_SQRT_2_OVER_PI * (x + 0.044715 * x * x * x)))


# --------------------------- fused Pallas kernel ----------------------------

def gptneo_fused_kernel(h0_ref, layers_ref, head_ref, hidden_ref, logits_ref,
                        *, batch, seq):
    M = batch * seq                      # 16 tokens
    HM = N_HEAD * M                      # 64 = heads x tokens (key axis, in lanes)
    seq_sh = seq.bit_length() - 1        # shifts instead of //,% (powers of two)
    m_sh = M.bit_length() - 1
    dh_sh = D_HEAD.bit_length() - 1

    h = h0_ref[...]                      # (M, D) f32, stays resident in vregs

    # ---- hoisted constants (built once, reused by both layers) -------------
    # additive attention bias over (query m) x (head h, key n) lanes:
    #   lane l = h * M + n ;  allow iff same batch element and n causal wrt m.
    mi = lax.broadcasted_iota(jnp.int32, (M, HM), 0)
    li = lax.broadcasted_iota(jnp.int32, (M, HM), 1)
    ni = jnp.bitwise_and(li, M - 1)
    ok = ((ni >> seq_sh) == (mi >> seq_sh)) & (
        jnp.bitwise_and(ni, seq - 1) <= jnp.bitwise_and(mi, seq - 1))
    attn_bias = jnp.where(ok, 0.0, _MASK_VALUE)                  # (M, H*M)

    # block-diagonal head selector: row r = h*M + n, col c = h'*Dh + d,
    # 1.0 iff h == h'.  Used to (a) mask replicated K/V per head, (b) compute
    # per-head softmax denominators already broadcast over the Dh lanes.
    ri = lax.broadcasted_iota(jnp.int32, (HM, D_MODEL), 0)
    ci = lax.broadcasted_iota(jnp.int32, (HM, D_MODEL), 1)
    head_sel = ((ri >> m_sh) == (ci >> dh_sh)).astype(jnp.float32)  # (H*M, D)

    for l in range(N_LAYER):                                     # static unroll
        lw = layers_ref.at[l]                                     # (ROWS,128) view
        ln1_g = lw[_R_LN:_R_LN + 1, 0:D_MODEL]
        ln1_b = lw[_R_LN:_R_LN + 1, D_MODEL:2 * D_MODEL]
        ln2_g = lw[_R_LN:_R_LN + 1, 2 * D_MODEL:3 * D_MODEL]
        ln2_b = lw[_R_LN:_R_LN + 1, 3 * D_MODEL:4 * D_MODEL]
        bo = lw[_R_BIAS:_R_BIAS + 1, 0:D_MODEL]
        b2 = lw[_R_BIAS:_R_BIAS + 1, D_MODEL:2 * D_MODEL]
        b1 = lw[_R_B1:_R_B1 + 1, :]

        # ------------------- attention sub-block ---------------------------
        a = _layernorm(h, ln1_g, ln1_b)
        qkv = jnp.dot(a, lw[_R_WQKV:_R_WQKV + D_MODEL, :],
                      preferred_element_type=jnp.float32)        # (M, 128)
        q = qkv[:, 0:D_MODEL]
        k = qkv[:, D_MODEL:2 * D_MODEL]
        v = qkv[:, 2 * D_MODEL:3 * D_MODEL]

        # replicate K/V once along rows (H copies) and zero out the columns
        # not owned by each copy's head -> block-diagonal K/V of shape (H*M, D)
        k_bd = jnp.concatenate([k] * N_HEAD, axis=0) * head_sel
        v_bd = jnp.concatenate([v] * N_HEAD, axis=0) * head_sel

        # per-head scores for all heads / all token pairs in ONE matmul:
        #   s[m, h*M + n] = sum_d q[m, h*Dh+d] * k[n, h*Dh+d]
        # (GPT-Neo convention: no 1/sqrt(d) score scaling.)
        s = lax.dot_general(q, k_bd, (((1,), (1,)), ((), ())),
                            preferred_element_type=jnp.float32)  # (M, H*M)
        s = s + attn_bias
        # one softmax chain per layer; shared per-row max is a valid shift
        # because normalization below is per (row, head).
        p = jnp.exp(s - jnp.max(s, axis=-1, keepdims=True))
        denom = jnp.dot(p, head_sel,
                        preferred_element_type=jnp.float32)      # (M, D) per-head sums
        ctx = jnp.dot(p, v_bd, preferred_element_type=jnp.float32)
        ctx = ctx * pl.reciprocal(denom, approx=True)            # merged-head (M, D)
        proj = jnp.dot(ctx, lw[_R_WO:_R_WO + D_MODEL, 0:D_MODEL],
                       preferred_element_type=jnp.float32)
        h = h + proj + bo

        # ------------------------ MLP sub-block -----------------------------
        m2 = _layernorm(h, ln2_g, ln2_b)
        ff = _gelu_new(jnp.dot(m2, lw[_R_W1:_R_W1 + D_MODEL, :],
                               preferred_element_type=jnp.float32) + b1)
        h = h + jnp.dot(ff, lw[_R_W2:_R_W2 + D_FF, 0:D_MODEL],
                        preferred_element_type=jnp.float32) + b2

    # final LayerNorm -> "transformer" hook output
    hidden = _layernorm(h,
                        head_ref[_R_LNF:_R_LNF + 1, 0:D_MODEL],
                        head_ref[_R_LNF:_R_LNF + 1, D_MODEL:2 * D_MODEL])
    hidden_ref[...] = hidden

    # tied lm_head: hidden @ wte^T (pre-transposed, zero-padded to 128 lanes)
    # -> lane-dense (M, 128) store; wrapper slices the first VOCAB columns.
    logits_ref[...] = jnp.dot(hidden, head_ref[_R_WTE:_R_WTE + D_MODEL, :],
                              preferred_element_type=jnp.float32)


def gptneo_forward_pallas(h0, layers_blob, head_blob, batch, seq):
    M = batch * seq
    assert (seq & (seq - 1)) == 0 and (M & (M - 1)) == 0, "power-of-two B*T/T"
    vmem = pl.BlockSpec(memory_space=pltpu.MemorySpace.VMEM)
    kernel = partial(gptneo_fused_kernel, batch=batch, seq=seq)
    hidden, logits_pad = pl.pallas_call(
        kernel,
        out_shape=(
            jax.ShapeDtypeStruct((M, D_MODEL), jnp.float32),   # "transformer" hook
            jax.ShapeDtypeStruct((M, 128), jnp.float32),       # padded logits slab
        ),
        in_specs=[vmem, vmem, vmem],
        out_specs=(vmem, vmem),
    )(h0, layers_blob, head_blob)
    return hidden, logits_pad[:, :VOCAB]


# --------------------------- parameters ------------------------------------

def init_params(seed=0):
    key = jax.random.PRNGKey(seed)
    k_wte, k_wpe, k_qkv, k_wo, k_w1, k_w2 = jax.random.split(key, 6)

    def nrm(k, shape):
        return (0.02 * jax.random.normal(k, shape)).astype(jnp.float32)

    L, D, F = N_LAYER, D_MODEL, D_FF
    return {
        "wte": nrm(k_wte, (VOCAB, D)),
        "wpe": nrm(k_wpe, (MAX_POS, D)),
        "ln1_g": jnp.ones((L, 1, D), jnp.float32),
        "ln1_b": jnp.zeros((L, 1, D), jnp.float32),
        "wqkv": nrm(k_qkv, (L, D, 3 * D)),               # [Wq | Wk | Wv], no bias
        "wo": nrm(k_wo, (L, D, D)),
        "bo": jnp.zeros((L, 1, D), jnp.float32),
        "ln2_g": jnp.ones((L, 1, D), jnp.float32),
        "ln2_b": jnp.zeros((L, 1, D), jnp.float32),
        "w1": nrm(k_w1, (L, D, F)),
        "b1": jnp.zeros((L, 1, F), jnp.float32),
        "w2": nrm(k_w2, (L, F, D)),
        "b2": jnp.zeros((L, 1, D), jnp.float32),
        "lnf_g": jnp.ones((1, D), jnp.float32),
        "lnf_b": jnp.zeros((1, D), jnp.float32),
    }


def pack_params(params):
    """Pack all weights into two lane-dense (rows, 128) VMEM blobs (done once)."""
    L, D, F = N_LAYER, D_MODEL, D_FF

    lb = jnp.zeros((L, _LAYER_ROWS, 128), jnp.float32)
    lb = lb.at[:, _R_WQKV:_R_WQKV + D, 0:3 * D].set(params["wqkv"])
    lb = lb.at[:, _R_W1:_R_W1 + D, 0:F].set(params["w1"])
    lb = lb.at[:, _R_W2:_R_W2 + F, 0:D].set(params["w2"])
    lb = lb.at[:, _R_WO:_R_WO + D, 0:D].set(params["wo"])
    lb = lb.at[:, _R_LN, 0:D].set(params["ln1_g"][:, 0])
    lb = lb.at[:, _R_LN, D:2 * D].set(params["ln1_b"][:, 0])
    lb = lb.at[:, _R_LN, 2 * D:3 * D].set(params["ln2_g"][:, 0])
    lb = lb.at[:, _R_LN, 3 * D:4 * D].set(params["ln2_b"][:, 0])
    lb = lb.at[:, _R_BIAS, 0:D].set(params["bo"][:, 0])
    lb = lb.at[:, _R_BIAS, D:2 * D].set(params["b2"][:, 0])
    lb = lb.at[:, _R_B1, :].set(params["b1"][:, 0])

    hb = jnp.zeros((_HEAD_ROWS, 128), jnp.float32)
    hb = hb.at[_R_WTE:_R_WTE + D, 0:VOCAB].set(params["wte"].T)  # pre-transposed wte
    hb = hb.at[_R_LNF, 0:D].set(params["lnf_g"][0])
    hb = hb.at[_R_LNF, D:2 * D].set(params["lnf_b"][0])

    return {"wte": params["wte"], "wpe": params["wpe"], "layers": lb, "head": hb}


# ----------------------------- forward -------------------------------------

@jax.jit
def _forward_core(packed, x):
    B, T = x.shape
    # token + position embeddings (2 KB gather; kept as a single plain-JAX op)
    h0 = packed["wte"][x] + packed["wpe"][:T][None, :, :]        # (B, T, D)
    h0 = h0.reshape(B * T, D_MODEL)
    hidden, logits = gptneo_forward_pallas(h0, packed["layers"], packed["head"], B, T)
    return hidden.reshape(B, T, D_MODEL), logits.reshape(B, T, VOCAB)


def new_model_forward(packed, x, output_layers=(0, 1)):
    """Emulates NewModel.forward: runs the (synthetic) GPT-Neo LM and records
    the outputs of the top-level submodules ("transformer", "lm_head") that the
    PyTorch module captures via register_forward_hook."""
    hidden_bt, logits_bt = _forward_core(packed, x)

    module_names = ["transformer", "lm_head"]
    module_outs = [hidden_bt, logits_bt]
    selected_out = OrderedDict()
    for i, name in enumerate(module_names):
        if i in output_layers:
            selected_out[name] = module_outs[i]

    # TODO(synk): HF returns a CausalLMOutputWithPast struct; we return raw logits.
    return logits_bt, selected_out


# ------------------------------ main ----------------------------------------

if __name__ == "__main__":
    params = init_params(seed=0)
    packed = pack_params(params)

    key = jax.random.PRNGKey(0)
    x = jax.random.randint(key, (2, MAX_POS), 0, VOCAB, dtype=jnp.int32)  # (B=2, T=8)

    logits, selected_out = new_model_forward(packed, x, output_layers=(0, 1))
    jax.block_until_ready(logits)
    for v in selected_out.values():
        jax.block_until_ready(v)

    assert logits.shape == (2, MAX_POS, VOCAB)
    assert selected_out["transformer"].shape == (2, MAX_POS, D_MODEL)
    assert selected_out["lm_head"].shape == (2, MAX_POS, VOCAB)
    assert bool(jnp.all(jnp.isfinite(logits)))
    assert bool(jnp.all(jnp.isfinite(selected_out["transformer"])))
    print("KERNEL_OK")
</pallas_src>

<mosaic_0001>
module attributes {stable_mosaic.version = 11 : i64} {
  func.func @gptneo_fused_kernel(%arg0: memref<16x32xf32, #tpu.memory_space<vmem>>, %arg1: memref<2x232x128xf32, #tpu.memory_space<vmem>>, %arg2: memref<40x128xf32, #tpu.memory_space<vmem>>, %arg3: memref<16x32xf32, #tpu.memory_space<vmem>>, %arg4: memref<16x128xf32, #tpu.memory_space<vmem>>) attributes {dimension_semantics = [], scalar_prefetch = 0 : i64, scratch_operands = 0 : i64, tpu.core_type = #tpu.core_type<tc>} {
    %c0 = arith.constant 0 : index
    %c0_0 = arith.constant 0 : index
    %0 = vector.load %arg0[%c0, %c0_0] : memref<16x32xf32, #tpu.memory_space<vmem>>, vector<16x32xf32>
    %1 = tpu.iota {dimensions = array<i32: 0>} : vector<16x64xi32>
    %2 = tpu.iota {dimensions = array<i32: 1>} : vector<16x64xi32>
    %c15_i32 = arith.constant 15 : i32
    %3 = vector.broadcast %c15_i32 : i32 to vector<16x64xi32>
    %4 = arith.andi %2, %3 : vector<16x64xi32>
    %c3_i32 = arith.constant 3 : i32
    %5 = vector.broadcast %c3_i32 : i32 to vector<16x64xi32>
    %6 = arith.shrsi %4, %5 : vector<16x64xi32>
    %c3_i32_1 = arith.constant 3 : i32
    %7 = vector.broadcast %c3_i32_1 : i32 to vector<16x64xi32>
    %8 = arith.shrsi %1, %7 : vector<16x64xi32>
    %9 = arith.cmpi eq, %6, %8 : vector<16x64xi32>
    %c7_i32 = arith.constant 7 : i32
    %10 = vector.broadcast %c7_i32 : i32 to vector<16x64xi32>
    %11 = arith.andi %4, %10 : vector<16x64xi32>
    %c7_i32_2 = arith.constant 7 : i32
    %12 = vector.broadcast %c7_i32_2 : i32 to vector<16x64xi32>
    %13 = arith.andi %1, %12 : vector<16x64xi32>
    %14 = arith.cmpi sle, %11, %13 : vector<16x64xi32>
    %15 = arith.andi %9, %14 : vector<16x64xi1>
    %cst = arith.constant 0.000000e+00 : f32
    %cst_3 = arith.constant -1.000000e+30 : f32
    %16 = vector.broadcast %cst : f32 to vector<16x64xf32>
    %17 = vector.broadcast %cst_3 : f32 to vector<16x64xf32>
    %18 = arith.select %15, %16, %17 : vector<16x64xi1>, vector<16x64xf32>
    %19 = tpu.iota {dimensions = array<i32: 0>} : vector<64x32xi32>
    %20 = tpu.iota {dimensions = array<i32: 1>} : vector<64x32xi32>
    %c4_i32 = arith.constant 4 : i32
    %21 = vector.broadcast %c4_i32 : i32 to vector<64x32xi32>
    %22 = arith.shrsi %19, %21 : vector<64x32xi32>
    %c3_i32_4 = arith.constant 3 : i32
    %23 = vector.broadcast %c3_i32_4 : i32 to vector<64x32xi32>
    %24 = arith.shrsi %20, %23 : vector<64x32xi32>
    %25 = arith.cmpi eq, %22, %24 : vector<64x32xi32>
    %26 = arith.extui %25 : vector<64x32xi1> to vector<64x32xi32>
    %27 = arith.sitofp %26 : vector<64x32xi32> to vector<64x32xf32>
    %c0_i32 = arith.constant 0 : i32
    %c0_i32_5 = arith.constant 0 : i32
    %c0_i32_6 = arith.constant 0 : i32
    %28 = tpu.memref_slice %arg1[%c0_i32, %c0_i32_5, %c0_i32_6] : memref<2x232x128xf32, #tpu.memory_space<vmem>> -> memref<1x232x128xf32, #tpu.memory_space<vmem>>
    %29 = tpu.memref_squeeze %28 : memref<1x232x128xf32, #tpu.memory_space<vmem>> -> memref<232x128xf32, #tpu.memory_space<vmem>>
    %c224 = arith.constant 224 : index
    %c0_7 = arith.constant 0 : index
    %30 = vector.load %29[%c224, %c0_7] : memref<232x128xf32, #tpu.memory_space<vmem>>, vector<1x32xf32>
    %c0_i32_8 = arith.constant 0 : i32
    %c0_i32_9 = arith.constant 0 : i32
    %c0_i32_10 = arith.constant 0 : i32
    %31 = tpu.memref_slice %arg1[%c0_i32_8, %c0_i32_9, %c0_i32_10] : memref<2x232x128xf32, #tpu.memory_space<vmem>> -> memref<1x232x128xf32, #tpu.memory_space<vmem>>
    %32 = tpu.memref_squeeze %31 : memref<1x232x128xf32, #tpu.memory_space<vmem>> -> memref<232x128xf32, #tpu.memory_space<vmem>>
    %c224_11 = arith.constant 224 : index
    %c32 = arith.constant 32 : index
    %33 = vector.load %32[%c224_11, %c32] : memref<232x128xf32, #tpu.memory_space<vmem>>, vector<1x32xf32>
    %c0_i32_12 = arith.constant 0 : i32
    %c0_i32_13 = arith.constant 0 : i32
    %c0_i32_14 = arith.constant 0 : i32
    %34 = tpu.memref_slice %arg1[%c0_i32_12, %c0_i32_13, %c0_i32_14] : memref<2x232x128xf32, #tpu.memory_space<vmem>> -> memref<1x232x128xf32, #tpu.memory_space<vmem>>
    %35 = tpu.memref_squeeze %34 : memref<1x232x128xf32, #tpu.memory_space<vmem>> -> memref<232x128xf32, #tpu.memory_space<vmem>>
    %c224_15 = arith.constant 224 : index
    %c64 = arith.constant 64 : index
    %36 = vector.load %35[%c224_15, %c64] : memref<232x128xf32, #tpu.memory_space<vmem>>, vector<1x32xf32>
    %c0_i32_16 = arith.constant 0 : i32
    %c0_i32_17 = arith.constant 0 : i32
    %c0_i32_18 = arith.constant 0 : i32
    %37 = tpu.memref_slice %arg1[%c0_i32_16, %c0_i32_17, %c0_i32_18] : memref<2x232x128xf32, #tpu.memory_space<vmem>> -> memref<1x232x128xf32, #tpu.memory_space<vmem>>
    %38 = tpu.memref_squeeze %37 : memref<1x232x128xf32, #tpu.memory_space<vmem>> -> memref<232x128xf32, #tpu.memory_space<vmem>>
    %c224_19 = arith.constant 224 : index
    %c96 = arith.constant 96 : index
    %39 = vector.load %38[%c224_19, %c96] : memref<232x128xf32, #tpu.memory_space<vmem>>, vector<1x32xf32>
    %c0_i32_20 = arith.constant 0 : i32
    %c0_i32_21 = arith.constant 0 : i32
    %c0_i32_22 = arith.constant 0 : i32
    %40 = tpu.memref_slice %arg1[%c0_i32_20, %c0_i32_21, %c0_i32_22] : memref<2x232x128xf32, #tpu.memory_space<vmem>> -> memref<1x232x128xf32, #tpu.memory_space<vmem>>
    %41 = tpu.memref_squeeze %40 : memref<1x232x128xf32, #tpu.memory_space<vmem>> -> memref<232x128xf32, #tpu.memory_space<vmem>>
    %c225 = arith.constant 225 : index
    %c0_23 = arith.constant 0 : index
    %42 = vector.load %41[%c225, %c0_23] : memref<232x128xf32, #tpu.memory_space<vmem>>, vector<1x32xf32>
    %c0_i32_24 = arith.constant 0 : i32
    %c0_i32_25 = arith.constant 0 : i32
    %c0_i32_26 = arith.constant 0 : i32
    %43 = tpu.memref_slice %arg1[%c0_i32_24, %c0_i32_25, %c0_i32_26] : memref<2x232x128xf32, #tpu.memory_space<vmem>> -> memref<1x232x128xf32, #tpu.memory_space<vmem>>
    %44 = tpu.memref_squeeze %43 : memref<1x232x128xf32, #tpu.memory_space<vmem>> -> memref<232x128xf32, #tpu.memory_space<vmem>>
    %c225_27 = arith.constant 225 : index
    %c32_28 = arith.constant 32 : index
    %45 = vector.load %44[%c225_27, %c32_28] : memref<232x128xf32, #tpu.memory_space<vmem>>, vector<1x32xf32>
    %c0_i32_29 = arith.constant 0 : i32
    %c0_i32_30 = arith.constant 0 : i32
    %c0_i32_31 = arith.constant 0 : i32
    %46 = tpu.memref_slice %arg1[%c0_i32_29, %c0_i32_30, %c0_i32_31] : memref<2x232x128xf32, #tpu.memory_space<vmem>> -> memref<1x232x128xf32, #tpu.memory_space<vmem>>
    %47 = tpu.memref_squeeze %46 : memref<1x232x128xf32, #tpu.memory_space<vmem>> -> memref<232x128xf32, #tpu.memory_space<vmem>>
    %c226 = arith.constant 226 : index
    %c0_32 = arith.constant 0 : index
    %48 = vector.load %47[%c226, %c0_32] : memref<232x128xf32, #tpu.memory_space<vmem>>, vector<1x128xf32>
    %cst_33 = arith.constant dense<0.000000e+00> : vector<16xf32>
    %49 = vector.multi_reduction <add>, %0, %cst_33 [1] : vector<16x32xf32> to vector<16xf32>
    %50 = vector.shape_cast %49 : vector<16xf32> to vector<16x1xf32>
    %cst_34 = arith.constant 3.200000e+01 : f32
    %51 = vector.broadcast %cst_34 : f32 to vector<16x1xf32>
    %52 = arith.divf %50, %51 : vector<16x1xf32>
    %53 = vector.broadcast %52 : vector<16x1xf32> to vector<16x32xf32>
    %54 = arith.subf %0, %53 : vector<16x32xf32>
    %55 = arith.mulf %54, %54 : vector<16x32xf32>
    %cst_35 = arith.constant dense<0.000000e+00> : vector<16xf32>
    %56 = vector.multi_reduction <add>, %55, %cst_35 [1] : vector<16x32xf32> to vector<16xf32>
    %57 = vector.shape_cast %56 : vector<16xf32> to vector<16x1xf32>
    %cst_36 = arith.constant 3.200000e+01 : f32
    %58 = vector.broadcast %cst_36 : f32 to vector<16x1xf32>
    %59 = arith.divf %57, %58 : vector<16x1xf32>
    %cst_37 = arith.constant 9.99999974E-6 : f32
    %60 = vector.broadcast %cst_37 : f32 to vector<16x1xf32>
    %61 = arith.addf %59, %60 : vector<16x1xf32>
    %62 = math.rsqrt %61 : vector<16x1xf32>
    %63 = vector.broadcast %62 : vector<16x1xf32> to vector<16x32xf32>
    %64 = arith.mulf %54, %63 : vector<16x32xf32>
    %65 = vector.broadcast %30 : vector<1x32xf32> to vector<16x32xf32>
    %66 = arith.mulf %64, %65 : vector<16x32xf32>
    %67 = vector.broadcast %33 : vector<1x32xf32> to vector<16x32xf32>
    %68 = arith.addf %66, %67 : vector<16x32xf32>
    %c0_i32_38 = arith.constant 0 : i32
    %c0_i32_39 = arith.constant 0 : i32
    %c0_i32_40 = arith.constant 0 : i32
    %69 = tpu.memref_slice %arg1[%c0_i32_38, %c0_i32_39, %c0_i32_40] : memref<2x232x128xf32, #tpu.memory_space<vmem>> -> memref<1x232x128xf32, #tpu.memory_space<vmem>>
    %70 = tpu.memref_squeeze %69 : memref<1x232x128xf32, #tpu.memory_space<vmem>> -> memref<232x128xf32, #tpu.memory_space<vmem>>
    %c0_41 = arith.constant 0 : index
    %c0_42 = arith.constant 0 : index
    %71 = vector.load %70[%c0_41, %c0_42] : memref<232x128xf32, #tpu.memory_space<vmem>>, vector<32x128xf32>
    %cst_43 = arith.constant dense<0.000000e+00> : vector<16x128xf32>
    %72 = tpu.matmul %68, %71, %cst_43 {dimension_numbers = #tpu.dot_dimension_numbers<[1], [0], [0], [1], [0, 0, 1, 1], [], []>} : vector<16x32xf32>, vector<32x128xf32>, vector<16x128xf32> -> vector<16x128xf32>
    %73 = vector.extract_strided_slice %72 {offsets = [0, 0], sizes = [16, 32], strides = [1, 1]} : vector<16x128xf32> to vector<16x32xf32>
    %74 = vector.extract_strided_slice %72 {offsets = [0, 32], sizes = [16, 32], strides = [1, 1]} : vector<16x128xf32> to vector<16x32xf32>
    %75 = vector.extract_strided_slice %72 {offsets = [0, 64], sizes = [16, 32], strides = [1, 1]} : vector<16x128xf32> to vector<16x32xf32>
    %76 = tpu.concatenate %74, %74, %74, %74 in 0 : vector<16x32xf32>, vector<16x32xf32>, vector<16x32xf32>, vector<16x32xf32> -> vector<64x32xf32>
    %77 = arith.mulf %76, %27 : vector<64x32xf32>
    %78 = tpu.concatenate %75, %75, %75, %75 in 0 : vector<16x32xf32>, vector<16x32xf32>, vector<16x32xf32>, vector<16x32xf32> -> vector<64x32xf32>
    %79 = arith.mulf %78, %27 : vector<64x32xf32>
    %cst_44 = arith.constant dense<0.000000e+00> : vector<16x64xf32>
    %80 = tpu.matmul %73, %77, %cst_44 {dimension_numbers = #tpu.dot_dimension_numbers<[1], [1], [0], [0], [0, 0, 1, 0], [], []>} : vector<16x32xf32>, vector<64x32xf32>, vector<16x64xf32> -> vector<16x64xf32>
    %81 = arith.addf %80, %18 : vector<16x64xf32>
    %cst_45 = arith.constant dense<0xFF800000> : vector<16xf32>
    %82 = vector.multi_reduction <maximumf>, %81, %cst_45 [1] : vector<16x64xf32> to vector<16xf32>
    %83 = vector.shape_cast %82 : vector<16xf32> to vector<16x1xf32>
    %84 = vector.broadcast %83 : vector<16x1xf32> to vector<16x64xf32>
    %85 = arith.subf %81, %84 : vector<16x64xf32>
    %86 = math.exp %85 : vector<16x64xf32>
    %cst_46 = arith.constant dense<0.000000e+00> : vector<16x32xf32>
    %87 = tpu.matmul %86, %27, %cst_46 {dimension_numbers = #tpu.dot_dimension_numbers<[1], [0], [0], [1], [0, 0, 1, 1], [], []>} : vector<16x64xf32>, vector<64x32xf32>, vector<16x32xf32> -> vector<16x32xf32>
    %cst_47 = arith.constant dense<0.000000e+00> : vector<16x32xf32>
    %88 = tpu.matmul %86, %79, %cst_47 {dimension_numbers = #tpu.dot_dimension_numbers<[1], [0], [0], [1], [0, 0, 1, 1], [], []>} : vector<16x64xf32>, vector<64x32xf32>, vector<16x32xf32> -> vector<16x32xf32>
    %89 = tpu.reciprocal %87 {approx = true} : vector<16x32xf32> -> vector<16x32xf32>
    %90 = arith.mulf %88, %89 : vector<16x32xf32>
    %c0_i32_48 = arith.constant 0 : i32
    %c0_i32_49 = arith.constant 0 : i32
    %c0_i32_50 = arith.constant 0 : i32
    %91 = tpu.memref_slice %arg1[%c0_i32_48, %c0_i32_49, %c0_i32_50] : memref<2x232x128xf32, #tpu.memory_space<vmem>> -> memref<1x232x128xf32, #tpu.memory_space<vmem>>
    %92 = tpu.memref_squeeze %91 : memref<1x232x128xf32, #tpu.memory_space<vmem>> -> memref<232x128xf32, #tpu.memory_space<vmem>>
    %c192 = arith.constant 192 : index
    %c0_51 = arith.constant 0 : index
    %93 = vector.load %92[%c192, %c0_51] : memref<232x128xf32, #tpu.memory_space<vmem>>, vector<32x32xf32>
    %cst_52 = arith.constant dense<0.000000e+00> : vector<16x32xf32>
    %94 = tpu.matmul %90, %93, %cst_52 {dimension_numbers = #tpu.dot_dimension_numbers<[1], [0], [0], [1], [0, 0, 1, 1], [], []>} : vector<16x32xf32>, vector<32x32xf32>, vector<16x32xf32> -> vector<16x32xf32>
    %95 = arith.addf %0, %94 : vector<16x32xf32>
    %96 = vector.broadcast %42 : vector<1x32xf32> to vector<16x32xf32>
    %97 = arith.addf %95, %96 : vector<16x32xf32>
    %cst_53 = arith.constant dense<0.000000e+00> : vector<16xf32>
    %98 = vector.multi_reduction <add>, %97, %cst_53 [1] : vector<16x32xf32> to vector<16xf32>
    %99 = vector.shape_cast %98 : vector<16xf32> to vector<16x1xf32>
    %cst_54 = arith.constant 3.200000e+01 : f32
    %100 = vector.broadcast %cst_54 : f32 to vector<16x1xf32>
    %101 = arith.divf %99, %100 : vector<16x1xf32>
    %102 = vector.broadcast %101 : vector<16x1xf32> to vector<16x32xf32>
    %103 = arith.subf %97, %102 : vector<16x32xf32>
    %104 = arith.mulf %103, %103 : vector<16x32xf32>
    %cst_55 = arith.constant dense<0.000000e+00> : vector<16xf32>
    %105 = vector.multi_reduction <add>, %104, %cst_55 [1] : vector<16x32xf32> to vector<16xf32>
    %106 = vector.shape_cast %105 : vector<16xf32> to vector<16x1xf32>
    %cst_56 = arith.constant 3.200000e+01 : f32
    %107 = vector.broadcast %cst_56 : f32 to vector<16x1xf32>
    %108 = arith.divf %106, %107 : vector<16x1xf32>
    %cst_57 = arith.constant 9.99999974E-6 : f32
    %109 = vector.broadcast %cst_57 : f32 to vector<16x1xf32>
    %110 = arith.addf %108, %109 : vector<16x1xf32>
    %111 = math.rsqrt %110 : vector<16x1xf32>
    %112 = vector.broadcast %111 : vector<16x1xf32> to vector<16x32xf32>
    %113 = arith.mulf %103, %112 : vector<16x32xf32>
    %114 = vector.broadcast %36 : vector<1x32xf32> to vector<16x32xf32>
    %115 = arith.mulf %113, %114 : vector<16x32xf32>
    %116 = vector.broadcast %39 : vector<1x32xf32> to vector<16x32xf32>
    %117 = arith.addf %115, %116 : vector<16x32xf32>
    %c0_i32_58 = arith.constant 0 : i32
    %c0_i32_59 = arith.constant 0 : i32
    %c0_i32_60 = arith.constant 0 : i32
    %118 = tpu.memref_slice %arg1[%c0_i32_58, %c0_i32_59, %c0_i32_60] : memref<2x232x128xf32, #tpu.memory_space<vmem>> -> memref<1x232x128xf32, #tpu.memory_space<vmem>>
    %119 = tpu.memref_squeeze %118 : memref<1x232x128xf32, #tpu.memory_space<vmem>> -> memref<232x128xf32, #tpu.memory_space<vmem>>
    %c32_61 = arith.constant 32 : index
    %c0_62 = arith.constant 0 : index
    %120 = vector.load %119[%c32_61, %c0_62] : memref<232x128xf32, #tpu.memory_space<vmem>>, vector<32x128xf32>
    %cst_63 = arith.constant dense<0.000000e+00> : vector<16x128xf32>
    %121 = tpu.matmul %117, %120, %cst_63 {dimension_numbers = #tpu.dot_dimension_numbers<[1], [0], [0], [1], [0, 0, 1, 1], [], []>} : vector<16x32xf32>, vector<32x128xf32>, vector<16x128xf32> -> vector<16x128xf32>
    %122 = vector.broadcast %48 : vector<1x128xf32> to vector<16x128xf32>
    %123 = arith.addf %121, %122 : vector<16x128xf32>
    %cst_64 = arith.constant 5.000000e-01 : f32
    %124 = vector.broadcast %cst_64 : f32 to vector<16x128xf32>
    %125 = arith.mulf %124, %123 : vector<16x128xf32>
    %cst_65 = arith.constant 4.471500e-02 : f32
    %126 = vector.broadcast %cst_65 : f32 to vector<16x128xf32>
    %127 = arith.mulf %126, %123 : vector<16x128xf32>
    %128 = arith.mulf %127, %123 : vector<16x128xf32>
    %129 = arith.mulf %128, %123 : vector<16x128xf32>
    %130 = arith.addf %123, %129 : vector<16x128xf32>
    %cst_66 = arith.constant 0.797884583 : f32
    %131 = vector.broadcast %cst_66 : f32 to vector<16x128xf32>
    %132 = arith.mulf %131, %130 : vector<16x128xf32>
    %133 = math.tanh %132 : vector<16x128xf32>
    %cst_67 = arith.constant 1.000000e+00 : f32
    %134 = vector.broadcast %cst_67 : f32 to vector<16x128xf32>
    %135 = arith.addf %134, %133 : vector<16x128xf32>
    %136 = arith.mulf %125, %135 : vector<16x128xf32>
    %c0_i32_68 = arith.constant 0 : i32
    %c0_i32_69 = arith.constant 0 : i32
    %c0_i32_70 = arith.constant 0 : i32
    %137 = tpu.memref_slice %arg1[%c0_i32_68, %c0_i32_69, %c0_i32_70] : memref<2x232x128xf32, #tpu.memory_space<vmem>> -> memref<1x232x128xf32, #tpu.memory_space<vmem>>
    %138 = tpu.memref_squeeze %137 : memref<1x232x128xf32, #tpu.memory_space<vmem>> -> memref<232x128xf32, #tpu.memory_space<vmem>>
    %c64_71 = arith.constant 64 : index
    %c0_72 = arith.constant 0 : index
    %139 = vector.load %138[%c64_71, %c0_72] : memref<232x128xf32, #tpu.memory_space<vmem>>, vector<128x32xf32>
    %cst_73 = arith.constant dense<0.000000e+00> : vector<16x32xf32>
    %140 = tpu.matmul %136, %139, %cst_73 {dimension_numbers = #tpu.dot_dimension_numbers<[1], [0], [0], [1], [0, 0, 1, 1], [], []>} : vector<16x128xf32>, vector<128x32xf32>, vector<16x32xf32> -> vector<16x32xf32>
    %141 = arith.addf %97, %140 : vector<16x32xf32>
    %142 = vector.broadcast %45 : vector<1x32xf32> to vector<16x32xf32>
    %143 = arith.addf %141, %142 : vector<16x32xf32>
    %c1_i32 = arith.constant 1 : i32
    %c0_i32_74 = arith.constant 0 : i32
    %c0_i32_75 = arith.constant 0 : i32
    %144 = tpu.memref_slice %arg1[%c1_i32, %c0_i32_74, %c0_i32_75] : memref<2x232x128xf32, #tpu.memory_space<vmem>> -> memref<1x232x128xf32, #tpu.memory_space<vmem>>
    %145 = tpu.memref_squeeze %144 : memref<1x232x128xf32, #tpu.memory_space<vmem>> -> memref<232x128xf32, #tpu.memory_space<vmem>>
    %c224_76 = arith.constant 224 : index
    %c0_77 = arith.constant 0 : index
    %146 = vector.load %145[%c224_76, %c0_77] : memref<232x128xf32, #tpu.memory_space<vmem>>, vector<1x32xf32>
    %c1_i32_78 = arith.constant 1 : i32
    %c0_i32_79 = arith.constant 0 : i32
    %c0_i32_80 = arith.constant 0 : i32
    %147 = tpu.memref_slice %arg1[%c1_i32_78, %c0_i32_79, %c0_i32_80] : memref<2x232x128xf32, #tpu.memory_space<vmem>> -> memref<1x232x128xf32, #tpu.memory_space<vmem>>
    %148 = tpu.memref_squeeze %147 : memref<1x232x128xf32, #tpu.memory_space<vmem>> -> memref<232x128xf32, #tpu.memory_space<vmem>>
    %c224_81 = arith.constant 224 : index
    %c32_82 = arith.constant 32 : index
    %149 = vector.load %148[%c224_81, %c32_82] : memref<232x128xf32, #tpu.memory_space<vmem>>, vector<1x32xf32>
    %c1_i32_83 = arith.constant 1 : i32
    %c0_i32_84 = arith.constant 0 : i32
    %c0_i32_85 = arith.constant 0 : i32
    %150 = tpu.memref_slice %arg1[%c1_i32_83, %c0_i32_84, %c0_i32_85] : memref<2x232x128xf32, #tpu.memory_space<vmem>> -> memref<1x232x128xf32, #tpu.memory_space<vmem>>
    %151 = tpu.memref_squeeze %150 : memref<1x232x128xf32, #tpu.memory_space<vmem>> -> memref<232x128xf32, #tpu.memory_space<vmem>>
    %c224_86 = arith.constant 224 : index
    %c64_87 = arith.constant 64 : index
    %152 = vector.load %151[%c224_86, %c64_87] : memref<232x128xf32, #tpu.memory_space<vmem>>, vector<1x32xf32>
    %c1_i32_88 = arith.constant 1 : i32
    %c0_i32_89 = arith.constant 0 : i32
    %c0_i32_90 = arith.constant 0 : i32
    %153 = tpu.memref_slice %arg1[%c1_i32_88, %c0_i32_89, %c0_i32_90] : memref<2x232x128xf32, #tpu.memory_space<vmem>> -> memref<1x232x128xf32, #tpu.memory_space<vmem>>
    %154 = tpu.memref_squeeze %153 : memref<1x232x128xf32, #tpu.memory_space<vmem>> -> memref<232x128xf32, #tpu.memory_space<vmem>>
    %c224_91 = arith.constant 224 : index
    %c96_92 = arith.constant 96 : index
    %155 = vector.load %154[%c224_91, %c96_92] : memref<232x128xf32, #tpu.memory_space<vmem>>, vector<1x32xf32>
    %c1_i32_93 = arith.constant 1 : i32
    %c0_i32_94 = arith.constant 0 : i32
    %c0_i32_95 = arith.constant 0 : i32
    %156 = tpu.memref_slice %arg1[%c1_i32_93, %c0_i32_94, %c0_i32_95] : memref<2x232x128xf32, #tpu.memory_space<vmem>> -> memref<1x232x128xf32, #tpu.memory_space<vmem>>
    %157 = tpu.memref_squeeze %156 : memref<1x232x128xf32, #tpu.memory_space<vmem>> -> memref<232x128xf32, #tpu.memory_space<vmem>>
    %c225_96 = arith.constant 225 : index
    %c0_97 = arith.constant 0 : index
    %158 = vector.load %157[%c225_96, %c0_97] : memref<232x128xf32, #tpu.memory_space<vmem>>, vector<1x32xf32>
    %c1_i32_98 = arith.constant 1 : i32
    %c0_i32_99 = arith.constant 0 : i32
    %c0_i32_100 = arith.constant 0 : i32
    %159 = tpu.memref_slice %arg1[%c1_i32_98, %c0_i32_99, %c0_i32_100] : memref<2x232x128xf32, #tpu.memory_space<vmem>> -> memref<1x232x128xf32, #tpu.memory_space<vmem>>
    %160 = tpu.memref_squeeze %159 : memref<1x232x128xf32, #tpu.memory_space<vmem>> -> memref<232x128xf32, #tpu.memory_space<vmem>>
    %c225_101 = arith.constant 225 : index
    %c32_102 = arith.constant 32 : index
    %161 = vector.load %160[%c225_101, %c32_102] : memref<232x128xf32, #tpu.memory_space<vmem>>, vector<1x32xf32>
    %c1_i32_103 = arith.constant 1 : i32
    %c0_i32_104 = arith.constant 0 : i32
    %c0_i32_105 = arith.constant 0 : i32
    %162 = tpu.memref_slice %arg1[%c1_i32_103, %c0_i32_104, %c0_i32_105] : memref<2x232x128xf32, #tpu.memory_space<vmem>> -> memref<1x232x128xf32, #tpu.memory_space<vmem>>
    %163 = tpu.memref_squeeze %162 : memref<1x232x128xf32, #tpu.memory_space<vmem>> -> memref<232x128xf32, #tpu.memory_space<vmem>>
    %c226_106 = arith.constant 226 : index
    %c0_107 = arith.constant 0 : index
    %164 = vector.load %163[%c226_106, %c0_107] : memref<232x128xf32, #tpu.memory_space<vmem>>, vector<1x128xf32>
    %cst_108 = arith.constant dense<0.000000e+00> : vector<16xf32>
    %165 = vector.multi_reduction <add>, %143, %cst_108 [1] : vector<16x32xf32> to vector<16xf32>
    %166 = vector.shape_cast %165 : vector<16xf32> to vector<16x1xf32>
    %cst_109 = arith.constant 3.200000e+01 : f32
    %167 = vector.broadcast %cst_109 : f32 to vector<16x1xf32>
    %168 = arith.divf %166, %167 : vector<16x1xf32>
    %169 = vector.broadcast %168 : vector<16x1xf32> to vector<16x32xf32>
    %170 = arith.subf %143, %169 : vector<16x32xf32>
    %171 = arith.mulf %170, %170 : vector<16x32xf32>
    %cst_110 = arith.constant dense<0.000000e+00> : vector<16xf32>
    %172 = vector.multi_reduction <add>, %171, %cst_110 [1] : vector<16x32xf32> to vector<16xf32>
    %173 = vector.shape_cast %172 : vector<16xf32> to vector<16x1xf32>
    %cst_111 = arith.constant 3.200000e+01 : f32
    %174 = vector.broadcast %cst_111 : f32 to vector<16x1xf32>
    %175 = arith.divf %173, %174 : vector<16x1xf32>
    %cst_112 = arith.constant 9.99999974E-6 : f32
    %176 = vector.broadcast %cst_112 : f32 to vector<16x1xf32>
    %177 = arith.addf %175, %176 : vector<16x1xf32>
    %178 = math.rsqrt %177 : vector<16x1xf32>
    %179 = vector.broadcast %178 : vector<16x1xf32> to vector<16x32xf32>
    %180 = arith.mulf %170, %179 : vector<16x32xf32>
    %181 = vector.broadcast %146 : vector<1x32xf32> to vector<16x32xf32>
    %182 = arith.mulf %180, %181 : vector<16x32xf32>
    %183 = vector.broadcast %149 : vector<1x32xf32> to vector<16x32xf32>
    %184 = arith.addf %182, %183 : vector<16x32xf32>
    %c1_i32_113 = arith.constant 1 : i32
    %c0_i32_114 = arith.constant 0 : i32
    %c0_i32_115 = arith.constant 0 : i32
    %185 = tpu.memref_slice %arg1[%c1_i32_113, %c0_i32_114, %c0_i32_115] : memref<2x232x128xf32, #tpu.memory_space<vmem>> -> memref<1x232x128xf32, #tpu.memory_space<vmem>>
    %186 = tpu.memref_squeeze %185 : memref<1x232x128xf32, #tpu.memory_space<vmem>> -> memref<232x128xf32, #tpu.memory_space<vmem>>
    %c0_116 = arith.constant 0 : index
    %c0_117 = arith.constant 0 : index
    %187 = vector.load %186[%c0_116, %c0_117] : memref<232x128xf32, #tpu.memory_space<vmem>>, vector<32x128xf32>
    %cst_118 = arith.constant dense<0.000000e+00> : vector<16x128xf32>
    %188 = tpu.matmul %184, %187, %cst_118 {dimension_numbers = #tpu.dot_dimension_numbers<[1], [0], [0], [1], [0, 0, 1, 1], [], []>} : vector<16x32xf32>, vector<32x128xf32>, vector<16x128xf32> -> vector<16x128xf32>
    %189 = vector.extract_strided_slice %188 {offsets = [0, 0], sizes = [16, 32], strides = [1, 1]} : vector<16x128xf32> to vector<16x32xf32>
    %190 = vector.extract_strided_slice %188 {offsets = [0, 32], sizes = [16, 32], strides = [1, 1]} : vector<16x128xf32> to vector<16x32xf32>
    %191 = vector.extract_strided_slice %188 {offsets = [0, 64], sizes = [16, 32], strides = [1, 1]} : vector<16x128xf32> to vector<16x32xf32>
    %192 = tpu.concatenate %190, %190, %190, %190 in 0 : vector<16x32xf32>, vector<16x32xf32>, vector<16x32xf32>, vector<16x32xf32> -> vector<64x32xf32>
    %193 = arith.mulf %192, %27 : vector<64x32xf32>
    %194 = tpu.concatenate %191, %191, %191, %191 in 0 : vector<16x32xf32>, vector<16x32xf32>, vector<16x32xf32>, vector<16x32xf32> -> vector<64x32xf32>
    %195 = arith.mulf %194, %27 : vector<64x32xf32>
    %cst_119 = arith.constant dense<0.000000e+00> : vector<16x64xf32>
    %196 = tpu.matmul %189, %193, %cst_119 {dimension_numbers = #tpu.dot_dimension_numbers<[1], [1], [0], [0], [0, 0, 1, 0], [], []>} : vector<16x32xf32>, vector<64x32xf32>, vector<16x64xf32> -> vector<16x64xf32>
    %197 = arith.addf %196, %18 : vector<16x64xf32>
    %cst_120 = arith.constant dense<0xFF800000> : vector<16xf32>
    %198 = vector.multi_reduction <maximumf>, %197, %cst_120 [1] : vector<16x64xf32> to vector<16xf32>
    %199 = vector.shape_cast %198 : vector<16xf32> to vector<16x1xf32>
    %200 = vector.broadcast %199 : vector<16x1xf32> to vector<16x64xf32>
    %201 = arith.subf %197, %200 : vector<16x64xf32>
    %202 = math.exp %201 : vector<16x64xf32>
    %cst_121 = arith.constant dense<0.000000e+00> : vector<16x32xf32>
    %203 = tpu.matmul %202, %27, %cst_121 {dimension_numbers = #tpu.dot_dimension_numbers<[1], [0], [0], [1], [0, 0, 1, 1], [], []>} : vector<16x64xf32>, vector<64x32xf32>, vector<16x32xf32> -> vector<16x32xf32>
    %cst_122 = arith.constant dense<0.000000e+00> : vector<16x32xf32>
    %204 = tpu.matmul %202, %195, %cst_122 {dimension_numbers = #tpu.dot_dimension_numbers<[1], [0], [0], [1], [0, 0, 1, 1], [], []>} : vector<16x64xf32>, vector<64x32xf32>, vector<16x32xf32> -> vector<16x32xf32>
    %205 = tpu.reciprocal %203 {approx = true} : vector<16x32xf32> -> vector<16x32xf32>
    %206 = arith.mulf %204, %205 : vector<16x32xf32>
    %c1_i32_123 = arith.constant 1 : i32
    %c0_i32_124 = arith.constant 0 : i32
    %c0_i32_125 = arith.constant 0 : i32
    %207 = tpu.memref_slice %arg1[%c1_i32_123, %c0_i32_124, %c0_i32_125] : memref<2x232x128xf32, #tpu.memory_space<vmem>> -> memref<1x232x128xf32, #tpu.memory_space<vmem>>
    %208 = tpu.memref_squeeze %207 : memref<1x232x128xf32, #tpu.memory_space<vmem>> -> memref<232x128xf32, #tpu.memory_space<vmem>>
    %c192_126 = arith.constant 192 : index
    %c0_127 = arith.constant 0 : index
    %209 = vector.load %208[%c192_126, %c0_127] : memref<232x128xf32, #tpu.memory_space<vmem>>, vector<32x32xf32>
    %cst_128 = arith.constant dense<0.000000e+00> : vector<16x32xf32>
    %210 = tpu.matmul %206, %209, %cst_128 {dimension_numbers = #tpu.dot_dimension_numbers<[1], [0], [0], [1], [0, 0, 1, 1], [], []>} : vector<16x32xf32>, vector<32x32xf32>, vector<16x32xf32> -> vector<16x32xf32>
    %211 = arith.addf %143, %210 : vector<16x32xf32>
    %212 = vector.broadcast %158 : vector<1x32xf32> to vector<16x32xf32>
    %213 = arith.addf %211, %212 : vector<16x32xf32>
    %cst_129 = arith.constant dense<0.000000e+00> : vector<16xf32>
    %214 = vector.multi_reduction <add>, %213, %cst_129 [1] : vector<16x32xf32> to vector<16xf32>
    %215 = vector.shape_cast %214 : vector<16xf32> to vector<16x1xf32>
    %cst_130 = arith.constant 3.200000e+01 : f32
    %216 = vector.broadcast %cst_130 : f32 to vector<16x1xf32>
    %217 = arith.divf %215, %216 : vector<16x1xf32>
    %218 = vector.broadcast %217 : vector<16x1xf32> to vector<16x32xf32>
    %219 = arith.subf %213, %218 : vector<16x32xf32>
    %220 = arith.mulf %219, %219 : vector<16x32xf32>
    %cst_131 = arith.constant dense<0.000000e+00> : vector<16xf32>
    %221 = vector.multi_reduction <add>, %220, %cst_131 [1] : vector<16x32xf32> to vector<16xf32>
    %222 = vector.shape_cast %221 : vector<16xf32> to vector<16x1xf32>
    %cst_132 = arith.constant 3.200000e+01 : f32
    %223 = vector.broadcast %cst_132 : f32 to vector<16x1xf32>
    %224 = arith.divf %222, %223 : vector<16x1xf32>
    %cst_133 = arith.constant 9.99999974E-6 : f32
    %225 = vector.broadcast %cst_133 : f32 to vector<16x1xf32>
    %226 = arith.addf %224, %225 : vector<16x1xf32>
    %227 = math.rsqrt %226 : vector<16x1xf32>
    %228 = vector.broadcast %227 : vector<16x1xf32> to vector<16x32xf32>
    %229 = arith.mulf %219, %228 : vector<16x32xf32>
    %230 = vector.broadcast %152 : vector<1x32xf32> to vector<16x32xf32>
    %231 = arith.mulf %229, %230 : vector<16x32xf32>
    %232 = vector.broadcast %155 : vector<1x32xf32> to vector<16x32xf32>
    %233 = arith.addf %231, %232 : vector<16x32xf32>
    %c1_i32_134 = arith.constant 1 : i32
    %c0_i32_135 = arith.constant 0 : i32
    %c0_i32_136 = arith.constant 0 : i32
    %234 = tpu.memref_slice %arg1[%c1_i32_134, %c0_i32_135, %c0_i32_136] : memref<2x232x128xf32, #tpu.memory_space<vmem>> -> memref<1x232x128xf32, #tpu.memory_space<vmem>>
    %235 = tpu.memref_squeeze %234 : memref<1x232x128xf32, #tpu.memory_space<vmem>> -> memref<232x128xf32, #tpu.memory_space<vmem>>
    %c32_137 = arith.constant 32 : index
    %c0_138 = arith.constant 0 : index
    %236 = vector.load %235[%c32_137, %c0_138] : memref<232x128xf32, #tpu.memory_space<vmem>>, vector<32x128xf32>
    %cst_139 = arith.constant dense<0.000000e+00> : vector<16x128xf32>
    %237 = tpu.matmul %233, %236, %cst_139 {dimension_numbers = #tpu.dot_dimension_numbers<[1], [0], [0], [1], [0, 0, 1, 1], [], []>} : vector<16x32xf32>, vector<32x128xf32>, vector<16x128xf32> -> vector<16x128xf32>
    %238 = vector.broadcast %164 : vector<1x128xf32> to vector<16x128xf32>
    %239 = arith.addf %237, %238 : vector<16x128xf32>
    %cst_140 = arith.constant 5.000000e-01 : f32
    %240 = vector.broadcast %cst_140 : f32 to vector<16x128xf32>
    %241 = arith.mulf %240, %239 : vector<16x128xf32>
    %cst_141 = arith.constant 4.471500e-02 : f32
    %242 = vector.broadcast %cst_141 : f32 to vector<16x128xf32>
    %243 = arith.mulf %242, %239 : vector<16x128xf32>
    %244 = arith.mulf %243, %239 : vector<16x128xf32>
    %245 = arith.mulf %244, %239 : vector<16x128xf32>
    %246 = arith.addf %239, %245 : vector<16x128xf32>
    %cst_142 = arith.constant 0.797884583 : f32
    %247 = vector.broadcast %cst_142 : f32 to vector<16x128xf32>
    %248 = arith.mulf %247, %246 : vector<16x128xf32>
    %249 = math.tanh %248 : vector<16x128xf32>
    %cst_143 = arith.constant 1.000000e+00 : f32
    %250 = vector.broadcast %cst_143 : f32 to vector<16x128xf32>
    %251 = arith.addf %250, %249 : vector<16x128xf32>
    %252 = arith.mulf %241, %251 : vector<16x128xf32>
    %c1_i32_144 = arith.constant 1 : i32
    %c0_i32_145 = arith.constant 0 : i32
    %c0_i32_146 = arith.constant 0 : i32
    %253 = tpu.memref_slice %arg1[%c1_i32_144, %c0_i32_145, %c0_i32_146] : memref<2x232x128xf32, #tpu.memory_space<vmem>> -> memref<1x232x128xf32, #tpu.memory_space<vmem>>
    %254 = tpu.memref_squeeze %253 : memref<1x232x128xf32, #tpu.memory_space<vmem>> -> memref<232x128xf32, #tpu.memory_space<vmem>>
    %c64_147 = arith.constant 64 : index
    %c0_148 = arith.constant 0 : index
    %255 = vector.load %254[%c64_147, %c0_148] : memref<232x128xf32, #tpu.memory_space<vmem>>, vector<128x32xf32>
    %cst_149 = arith.constant dense<0.000000e+00> : vector<16x32xf32>
    %256 = tpu.matmul %252, %255, %cst_149 {dimension_numbers = #tpu.dot_dimension_numbers<[1], [0], [0], [1], [0, 0, 1, 1], [], []>} : vector<16x128xf32>, vector<128x32xf32>, vector<16x32xf32> -> vector<16x32xf32>
    %257 = arith.addf %213, %256 : vector<16x32xf32>
    %258 = vector.broadcast %161 : vector<1x32xf32> to vector<16x32xf32>
    %259 = arith.addf %257, %258 : vector<16x32xf32>
    %c32_150 = arith.constant 32 : index
    %c0_151 = arith.constant 0 : index
    %260 = vector.load %arg2[%c32_150, %c0_151] : memref<40x128xf32, #tpu.memory_space<vmem>>, vector<1x32xf32>
    %c32_152 = arith.constant 32 : index
    %c32_153 = arith.constant 32 : index
    %261 = vector.load %arg2[%c32_152, %c32_153] : memref<40x128xf32, #tpu.memory_space<vmem>>, vector<1x32xf32>
    %cst_154 = arith.constant dense<0.000000e+00> : vector<16xf32>
    %262 = vector.multi_reduction <add>, %259, %cst_154 [1] : vector<16x32xf32> to vector<16xf32>
    %263 = vector.shape_cast %262 : vector<16xf32> to vector<16x1xf32>
    %cst_155 = arith.constant 3.200000e+01 : f32
    %264 = vector.broadcast %cst_155 : f32 to vector<16x1xf32>
    %265 = arith.divf %263, %264 : vector<16x1xf32>
    %266 = vector.broadcast %265 : vector<16x1xf32> to vector<16x32xf32>
    %267 = arith.subf %259, %266 : vector<16x32xf32>
    %268 = arith.mulf %267, %267 : vector<16x32xf32>
    %cst_156 = arith.constant dense<0.000000e+00> : vector<16xf32>
    %269 = vector.multi_reduction <add>, %268, %cst_156 [1] : vector<16x32xf32> to vector<16xf32>
    %270 = vector.shape_cast %269 : vector<16xf32> to vector<16x1xf32>
    %cst_157 = arith.constant 3.200000e+01 : f32
    %271 = vector.broadcast %cst_157 : f32 to vector<16x1xf32>
    %272 = arith.divf %270, %271 : vector<16x1xf32>
    %cst_158 = arith.constant 9.99999974E-6 : f32
    %273 = vector.broadcast %cst_158 : f32 to vector<16x1xf32>
    %274 = arith.addf %272, %273 : vector<16x1xf32>
    %275 = math.rsqrt %274 : vector<16x1xf32>
    %276 = vector.broadcast %275 : vector<16x1xf32> to vector<16x32xf32>
    %277 = arith.mulf %267, %276 : vector<16x32xf32>
    %278 = vector.broadcast %260 : vector<1x32xf32> to vector<16x32xf32>
    %279 = arith.mulf %277, %278 : vector<16x32xf32>
    %280 = vector.broadcast %261 : vector<1x32xf32> to vector<16x32xf32>
    %281 = arith.addf %279, %280 : vector<16x32xf32>
    %c0_159 = arith.constant 0 : index
    %c0_160 = arith.constant 0 : index
    %282 = vector.load %arg3[%c0_159, %c0_160] : memref<16x32xf32, #tpu.memory_space<vmem>>, vector<16x32xf32>
    tpu.vector_store %arg3[%c0_159, %c0_160], %281 {strides = array<i32>} : memref<16x32xf32, #tpu.memory_space<vmem>>, vector<16x32xf32>,
    %c0_161 = arith.constant 0 : index
    %c0_162 = arith.constant 0 : index
    %283 = vector.load %arg2[%c0_161, %c0_162] : memref<40x128xf32, #tpu.memory_space<vmem>>, vector<32x128xf32>
    %cst_163 = arith.constant dense<0.000000e+00> : vector<16x128xf32>
    %284 = tpu.matmul %281, %283, %cst_163 {dimension_numbers = #tpu.dot_dimension_numbers<[1], [0], [0], [1], [0, 0, 1, 1], [], []>} : vector<16x32xf32>, vector<32x128xf32>, vector<16x128xf32> -> vector<16x128xf32>
    %c0_164 = arith.constant 0 : index
    %c0_165 = arith.constant 0 : index
    %285 = vector.load %arg4[%c0_164, %c0_165] : memref<16x128xf32, #tpu.memory_space<vmem>>, vector<16x128xf32>
    tpu.vector_store %arg4[%c0_164, %c0_165], %284 {strides = array<i32>} : memref<16x128xf32, #tpu.memory_space<vmem>>, vector<16x128xf32>,
    return
  }
}

</mosaic_0001>

<bundles_post_ra>
// kernel: _forward_core.1
= control target key start
LH: loop header
LB: loop body
LE: loop exit
PB: predicated region body
PF: predicated region fallthrough
CT: control target
= control target key end

     0   :  { %10 = vsyncpa [#allocation3], 0  ;;  %s3384_s0 = inlined_call_operand.vmem [shape: f32[16,32], index: 0, kind: input, shape index: {}]   ;;  %s3385_s1 = inlined_call_operand.hbm [shape: f32[2,232,128], index: 1, kind: input, shape index: {}]   ;;  %s3386_s2 = inlined_call_operand.vmem [shape: f32[40,128], index: 2, kind: input, shape index: {}]   ;;  %s3387_s3 = inlined_call_operand.hbm [shape: f32[16,32], index: 3, kind: output, shape index: {0}]   ;;  %s3388_s4 = inlined_call_operand.vmem [shape: f32[16,128], index: 4, kind: output, shape index: {1}]  }
   0x1   :  { %11 = vsyncpa [#allocation4], 0  ;;  %s2831_s15 = smov [#allocation2]   ;;  %s2783_s19 = scalar_lea.hbm %s3385_s1, 7424 }
   0x2   :  { %s19_s16 = sshll.u32 %s2831_s15, 4  ;;  %p2784_p0 = scmp.ne.s32.totalorder %s3385_s1, %s2783_s19  ;;  %s20_s16 = int_to_ptr.vmem [resolvable:$true] %s19_s16 }
   0x3   :  { %p2787_p1 = scmp.lt.u32.totalorder %s2783_s19, %s3385_s1 }
   0x5   :  { %p2789_p2 = pnand %p2787_p1, %p2784_p0 }
   0x7   :  { %2792 = shalt.err (!%p2789_p2)
}
   0x8   :  { %s2793_s24 = scalar_lea.vmem %s20_s16, 7424  ;;  %p2798_p4 = scmp.lt.s32.totalorder %s20_s16, %s20_s16 }
   0x9   :  { %p2794_p3 = scmp.ne.s32.totalorder %s20_s16, %s2793_s24  ;;  %p2799_p5 = scmp.lt.s32.totalorder %s2793_s24, %s2793_s24 }
   0xb   :  { %p2800_p6 = por %p2799_p5, %p2798_p4 }
   0xd   :  { %p2801_p7 = pnand %p2800_p6, %p2794_p3 }
   0xf   :  { %2804 = shalt.err (!%p2801_p7)
}
  0x10   :  { %s2832_s25 = smov 128   ;;  %s2833_s26 = smov 8  }
  0x11   :  { %25 = dma.hbm_to_vmem [thread:$0]  %s3385_s1, 7424, %s20_s16, [#allocation3], %s2832_s25, %s2832_s25, %s2833_s26  }
  0x12   :  { %2827 = dma.done.wait [#allocation3], 7424  }
  0x13   :  { %2828 = vsyncadd [#allocation3], 4294959872  ;;  %vm95_vm0 = vcmask 261120   ;;  %v2884_v0 = vld [vmem:[%s3384_s0] sm:$0xff]  ;;  %v2889_v1 = vld [vmem:[%s3384_s0 + $0x8] sm:$0xff]  ;;  %s2834_s1 = smov 96   ;;  %v33_v21 = vlaneseq }
  0x14   :  { %v96_v2 = vsel %vm95_vm0, %v2884_v0, 0.0  ;;  %v99_v3 = vsel %vm95_vm0, %v2889_v1, 0.0  ;;  %v2895_v4 = vld [vmem:[#allocation2 + $0xe0] ss:$0 sm:$0xff]  ;;  %v136_v16 = vld [vmem:[#allocation2 + $0x8] sm:$0xff]  ;;  %v137_v18 = vld [vmem:[#allocation2 + $0x10] sm:$0xff] }
  0x15   :  { %97 = vadd.xlane.f32.xlu0 %v96_v2  ;;  %v135_v15 = vld [vmem:[#allocation2] sm:$0xff]  ;;  %v138_v19 = vld [vmem:[#allocation2 + $0x18] sm:$0xff]  ;;  %v2911_v22 = vshrl.u32 %v33_v21, 7  ;;  %v2913_v23 = vand.u32 127, %v33_v21  ;;  %v2835_v36 = vmov 0.0   ;;  %s2836_s0 = smov 32   ;;  %vm3038_vm9 = vmpackc.low %vm95_vm0, %vm95_vm0 }
  0x16   :  { %v2377_v17 = vpack.c.bf16 %v136_v16, %v135_v15  ;;  %v2381_v20 = vpack.c.bf16 %v138_v19, %v137_v18  ;;  %s2837_s7 = smov 64  }
  0x17   :  { %v2916_v24 = vadd.s32 8, %v2911_v22  ;;  %v59_v25 = vshra.s32 %v2911_v22, 4  ;;  %v67_v26 = vshra.s32 %v2913_v23, 3  ;;  %v53_v27 = vadd.s32 16, %v2911_v22 }
  0x18   :  { %2378 = vmatprep.subr.bf16.mxu1 %v2377_v17  ;;  %v54_v28 = vadd.s32 24, %v2911_v22  ;;  %v57_v29 = vadd.s32 48, %v2911_v22  ;;  %v58_v30 = vadd.s32 56, %v2911_v22  ;;  %v55_v31 = vadd.s32 32, %v2911_v22 }
  0x19   :  { %100 = vadd.xlane.f32.xlu0 %v99_v3  ;;  %2380 = vmatpush3.bf16.msra.mxu1 %v2377_v17  ;;  %v60_v32 = vshra.s32 %v2916_v24, 4  ;;  %vm2926_vm1 = vcmp.eq.s32.totalorder %v59_v25, %v67_v26  ;;  %v61_v34 = vshra.s32 %v53_v27, 4  ;;  %v56_v35 = vadd.s32 40, %v2911_v22 }
  0x1a   :  { %2382 = vmatprep.subr.bf16.mxu1 %v2381_v20  ;;  %v1905_v37 = vsel %vm2926_vm1, 1.0, %v2835_v36  ;;  %v62_v38 = vshra.s32 %v54_v28, 4  ;;  %v65_v39 = vshra.s32 %v57_v29, 4  ;;  %v66_v40 = vshra.s32 %v58_v30, 4 }
  0x1b   :  { %vm2933_vm2 = vcmp.eq.s32.totalorder %v60_v32, %v67_v26  ;;  %vm2937_vm3 = vcmp.eq.s32.totalorder %v61_v34, %v67_v26  ;;  %v63_v43 = vshra.s32 %v55_v31, 4  ;;  %v64_v44 = vshra.s32 %v56_v35, 4 }
  0x1c   :  { %v1906_v45 = vsel %vm2933_vm2, 1.0, %v2835_v36  ;;  %vm2943_vm4 = vcmp.eq.s32.totalorder %v62_v38, %v67_v26  ;;  %v1907_v47 = vsel %vm2937_vm3, 1.0, %v2835_v36  ;;  %vm2949_vm5 = vcmp.eq.s32.totalorder %v65_v39, %v67_v26  ;;  %vm3107_vm10 = vmpackc.low %vm2933_vm2, %vm2926_vm1 }
  0x1d   :  { %2384 = vmatpush3.bf16.msra.mxu1 %v2381_v20  ;;  %v2953_v49 = vpack.i.bf16 %v1906_v45, %v1905_v37  ;;  %v1908_v50 = vsel %vm2943_vm4, 1.0, %v2835_v36  ;;  %vm2957_vm6 = vcmp.eq.s32.totalorder %v66_v40, %v67_v26  ;;  %v1911_v52 = vsel %vm2949_vm5, 1.0, %v2835_v36  ;;  %vm3118_vm11 = vmpackc.low %vm2943_vm4, %vm2937_vm3 }
  0x1e   :  { %v1912_v53 = vsel %vm2957_vm6, 1.0, %v2835_v36  ;;  %vm2965_vm7 = vcmp.eq.s32.totalorder %v63_v43, %v67_v26  ;;  %vm2969_vm8 = vcmp.eq.s32.totalorder %v64_v44, %v67_v26  ;;  %v2624_v56 = vpack.i.bf16 %v1908_v50, %v1907_v47 }
  0x1f   :  { %v2634_v57 = vpack.i.bf16 %v1912_v53, %v1911_v52  ;;  %v1909_v58 = vsel %vm2965_vm7, 1.0, %v2835_v36  ;;  %v1910_v59 = vsel %vm2969_vm8, 1.0, %v2835_v36  ;;  %v38_v33 = vand.u32 15, %v2913_v23  ;;  %vm3148_vm4 = vmpackc.low %vm2969_vm8, %vm2965_vm7 }
  0x20   :  { %v2629_v60 = vpack.i.bf16 %v1910_v59, %v1909_v58  ;;  %v41_v42 = vshra.s32 %v2916_v24, 3  ;;  %vm413_vm3 = vcmask 523264  }
  0x21   :  { %v39_v41 = vshra.s32 %v38_v33, 3  ;;  %v44_v46 = vand.u32 7, %v38_v33 }
  0x23   :  { %vm43_vm12 = vcmp.eq.s32.totalorder %v39_v41, %v41_v42 }
  0x2f   :  { %130 = vrot.lane.b32.xlu0 %v2895_v4, %s2834_s1 }
  0x33   :  { %2635 = vrot.lane.b32.xlu0 %v2634_v57, %s2836_s0 }
  0xa2   :  { %v98_v5 = vpop.xlane.xlu0 %97 }
  0xa3   :  { %v103_v6 = vmul.f32 0.03125, %v98_v5 }
  0xa5   :  { %v2900_v7 = vsub.f32 %v2884_v0, %v103_v6 }
  0xa6   :  { %v101_v8 = vpop.xlane.xlu0 %100 }
  0xa7   :  { %v104_v9 = vmul.f32 0.03125, %v101_v8  ;;  %v107_v10 = vmul.f32 %v2900_v7, %v2900_v7 }
  0xa9   :  { %v2905_v11 = vsub.f32 %v2889_v1, %v104_v9  ;;  %v109_v12 = vsel %vm95_vm0, %v107_v10, 0.0 }
  0xaa   :  { %110 = vadd.xlane.f32.xlu1 %v109_v12  ;;  %v131_v9 = vpop.permute.xlu0 %130 }
  0xab   :  { %v108_v13 = vmul.f32 %v2905_v11, %v2905_v11 }
  0xad   :  { %v112_v14 = vsel %vm95_vm0, %v108_v13, 0.0 }
  0xae   :  { %113 = vadd.xlane.f32.xlu1 %v112_v14 }
  0xbf   :  { %2620 = vrot.lane.b32.xlu1 %v2953_v49, %s2836_s0 }
  0xc3   :  { %2625 = vrot.lane.b32.xlu1 %v2624_v56, %s2836_s0 }
  0xc7   :  { %2630 = vrot.lane.b32.xlu1 %v2629_v60, %s2836_s0 }
 0x137   :  { %v111_v61 = vpop.xlane.xlu1 %110 }
 0x138   :  { %v115_v62 = vmul.f32 0.03125, %v111_v61 }
 0x13a   :  { %v117_v63 = vadd.f32 1e-05, %v115_v62 }
 0x13b   :  { %v114_v2 = vpop.xlane.xlu1 %113 }
 0x13c   :  { %2739 = vrsqrt.f32 %v117_v63  ;;  %v116_v3 = vmul.f32 0.03125, %v114_v2 }
 0x13e   :  { %v118_v5 = vadd.f32 1e-05, %v116_v3 }
 0x13f   :  { %v2988_v17 = vpop.permute.xlu1 %2620 }
 0x140   :  { %2741 = vrsqrt.f32 %v118_v5  ;;  %v2623_v20 = vunpack.i.h.bf16 %v2988_v17  ;;  %v2622_v26 = vunpack.i.l.bf16 %v2988_v17 }
 0x143   :  { %v2990_v18 = vpop.permute.xlu1 %2625 }
 0x144   :  { %v2627_v27 = vunpack.i.l.bf16 %v2990_v18 }
 0x146   :  { %v2740_v6 = vpop.eup %2739 }
 0x147   :  { %v121_v8 = vmul.f32 %v2740_v6, %v2900_v7  ;;  %v2992_v19 = vpop.permute.xlu1 %2630  ;;  %v2994_v7 = vpop.permute.xlu0 %2635 }
 0x148   :  { %v2633_v21 = vunpack.i.h.bf16 %v2992_v19  ;;  %v2638_v25 = vunpack.i.h.bf16 %v2994_v7  ;;  %v2632_v28 = vunpack.i.l.bf16 %v2992_v19  ;;  %v2637_v29 = vunpack.i.l.bf16 %v2994_v7 }
 0x149   :  { %v127_v10 = vmul.f32 %v2895_v4, %v121_v8 }
 0x14a   :  { %v2742_v12 = vpop.eup %2741 }
 0x14b   :  { %v122_v13 = vmul.f32 %v2742_v12, %v2905_v11  ;;  %v133_v14 = vadd.f32 %v131_v9, %v127_v10  ;;  %v2628_v11 = vunpack.i.h.bf16 %v2990_v18 }
 0x14d   :  { %v128_v15 = vmul.f32 %v2895_v4, %v122_v13  ;;  %2124 = vmatprep.mubr.msk.f32.mxu1 %vm95_vm0, %v133_v14 }
 0x14f   :  { %v134_v16 = vadd.f32 %v131_v9, %v128_v15 }
 0x151   :  { %2125 = vmatmul.mubr.msk.f32.vlgmr.msra.gmra.mrb[0].mxu1 %vm95_vm0, %v134_v16 }
 0x224   :  { %v3004_v30 = vpop.f32.mrb[0].mxu1 }
 0x225   :  { %v211_v31 = vpop.f32.mrb[1].mxu1  ;;  %v255_v32 = vmul.f32 %v2628_v11, %v3004_v30  ;;  %v253_v34 = vmul.f32 %v2623_v20, %v3004_v30  ;;  %v257_v35 = vmul.f32 %v2633_v21, %v3004_v30  ;;  %v259_v36 = vmul.f32 %v2638_v25, %v3004_v30 }
 0x226   :  { %2143 = vmatprep.mubr.msk.f32.mxu1 %vm95_vm0, %v211_v31  ;;  %v254_v37 = vmul.f32 %v2627_v27, %v211_v31  ;;  %v252_v38 = vmul.f32 %v2622_v26, %v211_v31  ;;  %v256_v39 = vmul.f32 %v2632_v28, %v211_v31  ;;  %v258_v40 = vmul.f32 %v2637_v29, %v211_v31 }
 0x228   :  { %v2644_v43 = vpack.i.bf16 %v255_v32, %v254_v37  ;;  %v2639_v44 = vpack.i.bf16 %v253_v34, %v252_v38  ;;  %v2649_v45 = vpack.i.bf16 %v257_v35, %v256_v39  ;;  %v2654_v47 = vpack.i.bf16 %v259_v36, %v258_v40 }
 0x22a   :  { %2645 = vrot.lane.b32.xlu0 %v2644_v43, %s2834_s1  ;;  %2640 = vrot.lane.b32.xlu1 %v2639_v44, %s2834_s1 }
 0x22e   :  { %2650 = vrot.lane.b32.xlu1 %v2649_v45, %s2834_s1  ;;  %2655 = vrot.lane.b32.xlu0 %v2654_v47, %s2834_s1 }
 0x232   :  { %2660 = vrot.lane.b32.xlu1 %v2953_v49, %s2837_s7  ;;  %2665 = vrot.lane.b32.xlu0 %v2624_v56, %s2837_s7 }
 0x236   :  { %2670 = vrot.lane.b32.xlu1 %v2629_v60, %s2837_s7  ;;  %2675 = vrot.lane.b32.xlu0 %v2634_v57, %s2837_s7 }
 0x29c   :  { %v2641_v50 = vpop.permute.xlu1 %2640  ;;  %v2646_v52 = vpop.permute.xlu0 %2645 }
 0x29d   :  { %v2643_v53 = vunpack.i.h.bf16 %v2641_v50  ;;  %v2642_v58 = vunpack.i.l.bf16 %v2641_v50  ;;  %v2648_v59 = vunpack.i.h.bf16 %v2646_v52  ;;  %v2647_v61 = vunpack.i.l.bf16 %v2646_v52 }
 0x29f   :  { %v2385_v63 = vpack.c.bf16 %v2643_v53, %v2642_v58  ;;  %v2391_v56 = vpack.c.bf16 %v2648_v59, %v2647_v61  ;;  %v2838_v61 = vmov 1.0|1.0  }
 0x2a0   :  { %v2651_v49 = vpop.permute.xlu1 %2650  ;;  %v2656_v2 = vpop.permute.xlu0 %2655  ;;  %2410 = vmatprep.subr.msk.bf16.mxu0 %vm3107_vm10, %v2838_v61 }
 0x2a1   :  { %2387 = vmatprep.subr.msk.bf16.mxu1 %vm3038_vm9, %v2385_v63  ;;  %v2653_v57 = vunpack.i.h.bf16 %v2651_v49  ;;  %v2652_v60 = vunpack.i.l.bf16 %v2651_v49  ;;  %v2658_v50 = vunpack.i.h.bf16 %v2656_v2  ;;  %v2657_v52 = vunpack.i.l.bf16 %v2656_v2  ;;  %2412 = vmatpush3.bf16.msk.msra.mxu0 %vm3107_vm10, %v2838_v61 }
 0x2a2   :  { %2390 = vmatpush3.bf16.xpose.msk.msra.mxu1 %vm3038_vm9, %v2385_v63  ;;  %2414 = vmatprep.subr.msk.bf16.mxu0 %vm3118_vm11, %v2838_v61  ;;  %v40_v49 = vshra.s32 %v2911_v22, 3  ;;  %v45_v2 = vand.u32 7, %v2911_v22 }
 0x2a3   :  { %2393 = vmatprep.subr.msk.bf16.mxu1 %vm3038_vm9, %v2391_v56  ;;  %v2397_v16 = vpack.c.bf16 %v2653_v57, %v2652_v60  ;;  %v2403_v59 = vpack.c.bf16 %v2658_v50, %v2657_v52 }
 0x2a4   :  { %v3048_v3 = vpop.permute.xlu1 %2660  ;;  %v3050_v5 = vpop.permute.xlu0 %2665  ;;  %vm42_vm14 = vcmp.eq.s32.totalorder %v39_v41, %v40_v49  ;;  %vm47_vm15 = vcmp.le.s32.totalorder %v44_v46, %v45_v2 }
 0x2a5   :  { %v2663_v6 = vunpack.i.h.bf16 %v3048_v3  ;;  %v2662_v8 = vunpack.i.l.bf16 %v3048_v3  ;;  %v2668_v9 = vunpack.i.h.bf16 %v3050_v5  ;;  %v2667_v10 = vunpack.i.l.bf16 %v3050_v5  ;;  %2416 = vmatpush3.bf16.msk.msra.mxu0 %vm3118_vm11, %v2838_v61  ;;  %vm49_vm2 = vmand %vm42_vm14, %vm47_vm15 }
 0x2a6   :  { %2418 = vmatprep.subr.msk.bf16.mxu0 %vm3148_vm4, %v2838_v61 }
 0x2a7   :  { %v3059_v12 = vmul.f32 %v2663_v6, %v3004_v30  ;;  %v3063_v13 = vmul.f32 %v2662_v8, %v211_v31  ;;  %v287_v14 = vmul.f32 %v2668_v9, %v3004_v30  ;;  %v286_v15 = vmul.f32 %v2667_v10, %v211_v31 }
 0x2a8   :  { %v3070_v32 = vpop.permute.xlu1 %2670  ;;  %v3072_v34 = vpop.permute.xlu0 %2675 }
 0x2a9   :  { %v2673_v35 = vunpack.i.h.bf16 %v3070_v32  ;;  %v2672_v36 = vunpack.i.l.bf16 %v3070_v32  ;;  %v2678_v37 = vunpack.i.h.bf16 %v3072_v34  ;;  %v2677_v38 = vunpack.i.l.bf16 %v3072_v34  ;;  %2420 = vmatpush3.bf16.msk.msra.mxu0 %vm3148_vm4, %v2838_v61 }
 0x2aa   :  { %2396 = vmatpush3.bf16.xpose.msk.msra.mxu1 %vm3038_vm9, %v2391_v56  ;;  %v2684_v39 = vpack.i.bf16 %v287_v14, %v286_v15  ;;  %v2679_v40 = vpack.i.bf16 %v3059_v12, %v3063_v13  ;;  %v2839_v56 = vmov -1e+30  }
 0x2ab   :  { %v289_v43 = vmul.f32 %v2673_v35, %v3004_v30  ;;  %v288_v44 = vmul.f32 %v2672_v36, %v211_v31  ;;  %v291_v45 = vmul.f32 %v2678_v37, %v3004_v30  ;;  %v290_v47 = vmul.f32 %v2677_v38, %v211_v31  ;;  %2399 = vmatprep.subr.msk.bf16.mxu1 %vm3038_vm9, %v2397_v16 }
 0x2ac   :  { %2685 = vrot.lane.b32.xlu1 %v2684_v39, %s2837_s7  ;;  %v3138_v23 = vsel %vm49_vm2, 0.0, %v2839_v56 }
 0x2ad   :  { %v2689_v53 = vpack.i.bf16 %v289_v43, %v288_v44  ;;  %v2694_v58 = vpack.i.bf16 %v291_v45, %v290_v47 }
 0x2b2   :  { %2402 = vmatpush3.bf16.xpose.msk.msra.mxu1 %vm3038_vm9, %v2397_v16 }
 0x2b3   :  { %2405 = vmatprep.subr.msk.bf16.mxu1 %vm3038_vm9, %v2403_v59 }
 0x2ba   :  { %2408 = vmatpush3.bf16.xpose.msk.msra.mxu1 %vm3038_vm9, %v2403_v59 }
 0x2c1   :  { %2144 = vmatmul.mubr.msk.f32.vlgmr.msra.gmra.mrb[2].mxu1 %vm95_vm0, %v3004_v30  ;;  %v46_v30 = vand.u32 7, %v2916_v24 }
 0x2c3   :  { %vm48_vm13 = vcmp.le.s32.totalorder %v44_v46, %v46_v30 }
 0x2c4   :  { %vm50_vm1 = vmand %vm43_vm12, %vm48_vm13 }
 0x2c5   :  { %v3136_v57 = vsel %vm50_vm1, 0.0, %v2839_v56  ;;  %vm3163_vm12 = vmpackc.low %vm2957_vm6, %vm2949_vm5 }
 0x2c6   :  { %2422 = vmatprep.subr.msk.bf16.mxu0 %vm3163_vm12, %v2838_v61 }
 0x2c7   :  { %2424 = vmatpush3.bf16.msk.msra.mxu0 %vm3163_vm12, %v2838_v61 }
 0x31e   :  { %v2686_v55 = vpop.permute.xlu1 %2685 }
 0x394   :  { %v2145_v60 = vpop.f32.mrb[2].mxu1 }
 0x395   :  { %v410_v12 = vadd.f32 %v2145_v60, %v3136_v57  ;;  %v404_v24 = vpop.f32.mrb[3].mxu1 }
 0x396   :  { %v405_v13 = vadd.f32 %v404_v24, %v3138_v23  ;;  %v619_v24 = vld [vmem:[#allocation2 + $0xc8] sm:$0xff] }
 0x397   :  { %v417_v22 = vsel %vm413_vm3, %v410_v12, -inf }
 0x398   :  { %418 = vmax.xlane.f32.xlu0 %v417_v22  ;;  %v414_v14 = vsel %vm413_vm3, %v405_v13, -inf  ;;  %v620_v22 = vld [vmem:[#allocation2 + $0xd0] sm:$0xff] }
 0x399   :  { %415 = vmax.xlane.f32.xlu1 %v414_v14  ;;  %v621_v14 = vld [vmem:[#allocation2 + $0xd8] sm:$0xff] }
 0x3aa   :  { %2690 = vrot.lane.b32.xlu1 %v2689_v53, %s2837_s7  ;;  %v2687_v53 = vunpack.i.l.bf16 %v2686_v55 }
 0x3ae   :  { %2680 = vrot.lane.b32.xlu0 %v2679_v40, %s2837_s7  ;;  %v2688_v40 = vunpack.i.h.bf16 %v2686_v55  ;;  %v2445_v55 = vpack.c.bf16 %v621_v14, %v620_v22  ;;  %v748_v22 = vld [vmem:[#allocation2 + $0x28] sm:$0xff] }
 0x3b2   :  { %2695 = vrot.lane.b32.xlu0 %v2694_v58, %s2837_s7  ;;  %v2429_v58 = vpack.c.bf16 %v2688_v40, %v2687_v53 }
 0x425   :  { %v419_v48 = vpop.xlane.xlu0 %418 }
 0x426   :  { %v421_v16 = vsub.f32 %v410_v12, %v419_v48  ;;  %v416_v51 = vpop.xlane.xlu1 %415  ;;  %v618_v12 = vld [vmem:[#allocation2 + $0xc0] sm:$0xff] }
 0x427   :  { %v420_v39 = vsub.f32 %v405_v13, %v416_v51  ;;  %v2441_v13 = vpack.c.bf16 %v619_v24, %v618_v12 }
 0x428   :  { %v424_v43 = vmul.f32 1.442695, %v421_v16 }
 0x429   :  { %v422_v44 = vmul.f32 1.442695, %v420_v39  ;;  %v2681_v45 = vpop.permute.xlu0 %2680  ;;  %2442 = vmatprep.subr.bf16.mxu1 %v2441_v13 }
 0x42a   :  { %v2683_v47 = vunpack.i.h.bf16 %v2681_v45  ;;  %v2682_v50 = vunpack.i.l.bf16 %v2681_v45  ;;  %v2691_v59 = vpop.permute.xlu1 %2690  ;;  %2444 = vmatpush3.bf16.msra.mxu1 %v2441_v13  ;;  %v747_v13 = vld [vmem:[#allocation2 + $0x20] sm:$0xff] }
 0x42b   :  { %2743 = vpow2.f32 %v422_v44  ;;  %v2693_v42 = vunpack.i.h.bf16 %v2691_v59  ;;  %v2692_v46 = vunpack.i.l.bf16 %v2691_v59  ;;  %2446 = vmatprep.subr.bf16.mxu1 %v2445_v55  ;;  %v2449_v14 = vpack.c.bf16 %v748_v22, %v747_v13  ;;  %v858_v13 = vld [vmem:[#allocation2 + $0x60] sm:$0xff]  ;;  %v859_v22 = vld [vmem:[#allocation2 + $0x68] sm:$0xff] }
 0x42c   :  { %2745 = vpow2.f32 %v424_v43  ;;  %v2425_v52 = vpack.c.bf16 %v2683_v47, %v2682_v50  ;;  %v1940_v50 = vld [vmem:[#allocation2 + $0xe1] ss:$0 sm:$0xff] }
 0x42d   :  { %v2696_v30 = vpop.permute.xlu0 %2695  ;;  %v2433_v49 = vpack.c.bf16 %v2693_v42, %v2692_v46 }
 0x42e   :  { %2426 = vmatprep.subr.bf16.mxu0 %v2425_v52  ;;  %v2698_v2 = vunpack.i.h.bf16 %v2696_v30  ;;  %v2697_v56 = vunpack.i.l.bf16 %v2696_v30  ;;  %2448 = vmatpush3.bf16.msra.mxu1 %v2445_v55  ;;  %v749_v55 = vld [vmem:[#allocation2 + $0x30] sm:$0xff] }
 0x430   :  { %v2437_v60 = vpack.c.bf16 %v2698_v2, %v2697_v56 }
 0x435   :  { %v2744_v33 = vpop.eup %2743 }
 0x436   :  { %v2746_v41 = vpop.eup %2745  ;;  %2162 = vmatprep.mubr.msk.f32.mxu0 %vm413_vm3, %v2744_v33 }
 0x437   :  { %2163 = vmatmul.mubr.msk.f32.vlgmr.msra.gmra.mrb[0].mxu0 %vm413_vm3, %v2746_v41 }
 0x438   :  { %2428 = vmatpush3.bf16.msra.mxu0 %v2425_v52  ;;  %2181 = vmatprep.mubr.msk.f32.mxu0 %vm413_vm3, %v2744_v33 }
 0x439   :  { %2430 = vmatprep.subr.bf16.mxu0 %v2429_v58 }
 0x43c   :  { %2432 = vmatpush3.bf16.msra.mxu0 %v2429_v58 }
 0x43d   :  { %2434 = vmatprep.subr.bf16.mxu0 %v2433_v49 }
 0x440   :  { %2436 = vmatpush3.bf16.msra.mxu0 %v2433_v49 }
 0x441   :  { %2438 = vmatprep.subr.bf16.mxu0 %v2437_v60 }
 0x444   :  { %2440 = vmatpush3.bf16.msra.mxu0 %v2437_v60 }
 0x445   :  { %2450 = vmatprep.subr.bf16.mxu0 %v2449_v14 }
 0x447   :  { %2182 = vmatmul.mubr.msk.f32.vlgmr.msra.gmra.mrb[2].mxu0 %vm413_vm3, %v2746_v41 }
 0x448   :  { %2452 = vmatpush3.bf16.msra.mxu0 %v2449_v14  ;;  %v2465_v14 = vpack.c.bf16 %v859_v22, %v858_v13 }
 0x50a   :  { %v2164_v48 = vpop.f32.mrb[0].mxu0 }
 0x50b   :  { %v498_v16 = vpop.f32.mrb[1].mxu0  ;;  %2747 = vrcp.f32 %v2164_v48  ;;  %v750_v48 = vld [vmem:[#allocation2 + $0x38] sm:$0xff] }
 0x50c   :  { %2749 = vrcp.f32 %v498_v16  ;;  %v2453_v16 = vpack.c.bf16 %v750_v48, %v749_v55  ;;  %v861_v55 = vld [vmem:[#allocation2 + $0x78] sm:$0xff]  ;;  %v862_v48 = vld [vmem:[#allocation2 + $0x80] sm:$0xff] }
 0x50e   :  { %2454 = vmatprep.subr.bf16.mxu0 %v2453_v16 }
 0x50f   :  { %2456 = vmatpush3.bf16.msra.mxu0 %v2453_v16  ;;  %v863_v16 = vld [vmem:[#allocation2 + $0x88] sm:$0xff] }
 0x515   :  { %v2748_v51 = vpop.eup %2747 }
 0x516   :  { %v2750_v43 = vpop.eup %2749 }
 0x51a   :  { %v2183_v39 = vpop.f32.mrb[2].mxu0 }
 0x51b   :  { %v617_v44 = vmul.f32 %v2748_v51, %v2183_v39  ;;  %v605_v45 = vpop.f32.mrb[3].mxu0  ;;  %v854_v51 = vld [vmem:[#allocation2 + $0x40] sm:$0xff]  ;;  %v855_v39 = vld [vmem:[#allocation2 + $0x48] sm:$0xff] }
 0x51c   :  { %v616_v47 = vmul.f32 %v2750_v43, %v605_v45  ;;  %v2457_v43 = vpack.c.bf16 %v855_v39, %v854_v51  ;;  %v864_v51 = vld [vmem:[#allocation2 + $0x90] sm:$0xff]  ;;  %v2473_v39 = vpack.c.bf16 %v863_v16, %v862_v48 }
 0x51e   :  { %2192 = vmatprep.mubr.msk.f32.mxu1 %vm95_vm0, %v616_v47  ;;  %2458 = vmatprep.subr.bf16.mxu1 %v2457_v43 }
 0x51f   :  { %2193 = vmatmul.mubr.msk.f32.vlgmr.msra.gmra.mrb[4].mxu1 %vm95_vm0, %v617_v44 }
 0x520   :  { %2460 = vmatpush3.bf16.msra.mxu1 %v2457_v43  ;;  %v865_v43 = vld [vmem:[#allocation2 + $0x98] sm:$0xff] }
 0x5f2   :  { %v2194_v52 = vpop.f32.mrb[4].mxu1 }
 0x5f3   :  { %v704_v40 = vadd.f32 %v2194_v52, %v2889_v1  ;;  %v694_v53 = vpop.f32.mrb[5].mxu1 }
 0x5f4   :  { %v703_v59 = vadd.f32 %v694_v53, %v2884_v0 }
 0x5f5   :  { %v3183_v33 = vadd.f32 %v1940_v50, %v704_v40 }
 0x5f6   :  { %v3185_v41 = vadd.f32 %v1940_v50, %v703_v59 }
 0x5f7   :  { %v714_v58 = vsel %vm95_vm0, %v3183_v33, 0.0 }
 0x5f8   :  { %715 = vadd.xlane.f32.xlu0 %v714_v58  ;;  %v711_v42 = vsel %vm95_vm0, %v3185_v41, 0.0 }
 0x5f9   :  { %712 = vadd.xlane.f32.xlu1 %v711_v42 }
 0x60a   :  { %737 = vrot.lane.b32.xlu1 %v2895_v4, %s2837_s7 }
 0x60e   :  { %948 = vrot.lane.b32.xlu1 %v1940_v50, %s2834_s1 }
 0x685   :  { %v716_v1 = vpop.xlane.xlu0 %715 }
 0x686   :  { %v718_v46 = vmul.f32 0.03125, %v716_v1  ;;  %v713_v0 = vpop.xlane.xlu1 %712 }
 0x687   :  { %v717_v30 = vmul.f32 0.03125, %v713_v0 }
 0x688   :  { %v720_v49 = vsub.f32 %v3183_v33, %v718_v46 }
 0x689   :  { %v719_v2 = vsub.f32 %v3185_v41, %v717_v30 }
 0x68a   :  { %v722_v12 = vmul.f32 %v720_v49, %v720_v49  ;;  %v738_v53 = vpop.permute.xlu1 %737 }
 0x68b   :  { %v721_v56 = vmul.f32 %v719_v2, %v719_v2 }
 0x68c   :  { %v726_v24 = vsel %vm95_vm0, %v722_v12, 0.0  ;;  %v857_v12 = vld [vmem:[#allocation2 + $0x58] sm:$0xff] }
 0x68d   :  { %v723_v60 = vsel %vm95_vm0, %v721_v56, 0.0 }
 0x68e   :  { %724 = vadd.xlane.f32.xlu0 %v723_v60  ;;  %v856_v60 = vld [vmem:[#allocation2 + $0x50] sm:$0xff] }
 0x692   :  { %727 = vadd.xlane.f32.xlu0 %v726_v24  ;;  %v2461_v24 = vpack.c.bf16 %v857_v12, %v856_v60 }
 0x694   :  { %2462 = vmatprep.subr.bf16.mxu1 %v2461_v24 }
 0x695   :  { %2464 = vmatpush3.bf16.msra.mxu1 %v2461_v24 }
 0x696   :  { %2466 = vmatprep.subr.bf16.mxu1 %v2465_v14 }
 0x699   :  { %2468 = vmatpush3.bf16.msra.mxu1 %v2465_v14 }
 0x6a8   :  { %742 = vrot.lane.b32.xlu0 %v2895_v4, %s2836_s0 }
 0x71b   :  { %v725_v44 = vpop.xlane.xlu0 %724 }
 0x71c   :  { %v729_v45 = vmul.f32 0.03125, %v725_v44  ;;  %v2477_v44 = vpack.c.bf16 %v865_v43, %v864_v51 }
 0x71e   :  { %v731_v47 = vadd.f32 1e-05, %v729_v45  ;;  %v866_v45 = vld [vmem:[#allocation2 + $0xa0] sm:$0xff] }
 0x71f   :  { %v728_v50 = vpop.xlane.xlu0 %727 }
 0x720   :  { %2751 = vrsqrt.f32 %v731_v47  ;;  %v730_v4 = vmul.f32 0.03125, %v728_v50  ;;  %v867_v47 = vld [vmem:[#allocation2 + $0xa8] sm:$0xff] }
 0x721   :  { %v2481_v50 = vpack.c.bf16 %v867_v47, %v866_v45 }
 0x722   :  { %v732_v52 = vadd.f32 1e-05, %v730_v4  ;;  %v868_v4 = vld [vmem:[#allocation2 + $0xb0] sm:$0xff] }
 0x723   :  { %v743_v58 = vpop.permute.xlu0 %742 }
 0x724   :  { %2753 = vrsqrt.f32 %v732_v52  ;;  %v869_v52 = vld [vmem:[#allocation2 + $0xb8] sm:$0xff] }
 0x72a   :  { %v2752_v40 = vpop.eup %2751 }
 0x72b   :  { %v735_v59 = vmul.f32 %v2752_v40, %v719_v2  ;;  %v860_v2 = vld [vmem:[#allocation2 + $0x70] sm:$0xff]  ;;  %v2485_v40 = vpack.c.bf16 %v869_v52, %v868_v4 }
 0x72d   :  { %v740_v42 = vmul.f32 %v738_v53, %v735_v59 }
 0x72e   :  { %v2754_v1 = vpop.eup %2753 }
 0x72f   :  { %v736_v46 = vmul.f32 %v2754_v1, %v720_v49  ;;  %v745_v0 = vadd.f32 %v743_v58, %v740_v42  ;;  %v2469_v49 = vpack.c.bf16 %v861_v55, %v860_v2 }
 0x731   :  { %v741_v30 = vmul.f32 %v738_v53, %v736_v46  ;;  %2203 = vmatprep.mubr.msk.f32.mxu0 %vm95_vm0, %v745_v0  ;;  %2470 = vmatprep.subr.bf16.mxu1 %v2469_v49  ;;  %v1941_v53 = vld [vmem:[#allocation2 + $0xe2] ss:$0 sm:$0xff] }
 0x732   :  { %2472 = vmatpush3.bf16.msra.mxu1 %v2469_v49 }
 0x733   :  { %v746_v56 = vadd.f32 %v743_v58, %v741_v30  ;;  %2474 = vmatprep.subr.bf16.mxu1 %v2473_v39 }
 0x735   :  { %2204 = vmatmul.mubr.msk.f32.vlgmr.msra.gmra.mrb[4].mxu0 %vm95_vm0, %v746_v56 }
 0x736   :  { %2476 = vmatpush3.bf16.msra.mxu1 %v2473_v39 }
 0x737   :  { %2478 = vmatprep.subr.bf16.mxu1 %v2477_v44 }
 0x73a   :  { %2480 = vmatpush3.bf16.msra.mxu1 %v2477_v44  ;;  %v949_v44 = vpop.permute.xlu1 %948 }
 0x73b   :  { %2482 = vmatprep.subr.bf16.mxu1 %v2481_v50 }
 0x73e   :  { %2484 = vmatpush3.bf16.msra.mxu1 %v2481_v50 }
 0x73f   :  { %2486 = vmatprep.subr.bf16.mxu1 %v2485_v40 }
 0x742   :  { %2488 = vmatpush3.bf16.msra.mxu1 %v2485_v40 }
 0x743   :  { %2522 = vmatprep.subr.msk.bf16.mxu1 %vm3107_vm10, %v2838_v61 }
 0x808   :  { %v2205_v59 = vpop.f32.mrb[4].mxu0 }
 0x809   :  { %v833_v58 = vadd.f32 %v2205_v59, %v1941_v53  ;;  %v827_v42 = vpop.f32.mrb[5].mxu0 }
 0x80a   :  { %v828_v1 = vadd.f32 %v1941_v53, %v827_v42 }
 0x80b   :  { %v839_v46 = vmul.f32 0.044715, %v833_v58  ;;  %v837_v51 = vmul.f32 0.5, %v833_v58 }
 0x80c   :  { %v838_v0 = vmul.f32 0.044715, %v828_v1  ;;  %v836_v48 = vmul.f32 0.5, %v828_v1 }
 0x80d   :  { %v841_v30 = vmul.f32 %v839_v46, %v833_v58  ;;  %v995_v46 = vld [vmem:[#allocation2 + $0xe8] sm:$0xff] }
 0x80e   :  { %v840_v56 = vmul.f32 %v838_v0, %v828_v1  ;;  %v996_v0 = vld [vmem:[#allocation2 + $0xf0] sm:$0xff] }
 0x80f   :  { %v843_v60 = vmul.f32 %v841_v30, %v833_v58  ;;  %v3240_v30 = vld [vmem:[#allocation2 + $0x1c8] ss:$0 sm:$0xff] }
 0x810   :  { %v842_v12 = vmul.f32 %v840_v56, %v828_v1  ;;  %v2489_v56 = vpack.c.bf16 %v996_v0, %v995_v46 }
 0x811   :  { %v845_v24 = vadd.f32 %v843_v60, %v833_v58  ;;  %v997_v60 = vld [vmem:[#allocation2 + $0xf8] sm:$0xff] }
 0x812   :  { %v844_v13 = vadd.f32 %v842_v12, %v828_v1  ;;  %2490 = vmatprep.subr.bf16.mxu0 %v2489_v56  ;;  %v998_v12 = vld [vmem:[#allocation2 + $0x100] sm:$0xff] }
 0x813   :  { %v847_v22 = vmul.f32 0.7978846, %v845_v24  ;;  %2492 = vmatpush3.bf16.msra.mxu0 %v2489_v56  ;;  %v2493_v24 = vpack.c.bf16 %v998_v12, %v997_v60 }
 0x814   :  { %v846_v14 = vmul.f32 0.7978846, %v844_v13 }
 0x815   :  { %2755 = vtanh.f32 %v847_v22  ;;  %2494 = vmatprep.subr.bf16.mxu0 %v2493_v24 }
 0x816   :  { %2757 = vtanh.f32 %v846_v14 }
 0x817   :  { %2496 = vmatpush3.bf16.msra.mxu0 %v2493_v24 }
 0x81f   :  { %v2756_v2 = vpop.eup %2755 }
 0x820   :  { %v2758_v55 = vpop.eup %2757  ;;  %v851_v49 = vadd.f32 1.0, %v2756_v2 }
 0x821   :  { %v850_v16 = vadd.f32 1.0, %v2758_v55 }
 0x822   :  { %v853_v43 = vmul.f32 %v851_v49, %v837_v51 }
 0x823   :  { %v852_v39 = vmul.f32 %v850_v16, %v836_v48 }
 0x825   :  { %2238 = vmatprep.mubr.f32.mxu1 %v852_v39 }
 0x826   :  { %2239 = vmatmul.mubr.f32.vlgmr.msra.gmra.mrb[6].mxu1 %v853_v43 }
 0x827   :  { %2524 = vmatpush3.bf16.msk.msra.mxu1 %vm3107_vm10, %v2838_v61 }
 0x828   :  { %2526 = vmatprep.subr.msk.bf16.mxu1 %vm3118_vm11, %v2838_v61 }
 0x82b   :  { %2528 = vmatpush3.bf16.msk.msra.mxu1 %vm3118_vm11, %v2838_v61 }
 0x82c   :  { %2530 = vmatprep.subr.msk.bf16.mxu1 %vm3148_vm4, %v2838_v61 }
 0x82f   :  { %2532 = vmatpush3.bf16.msk.msra.mxu1 %vm3148_vm4, %v2838_v61 }
 0x830   :  { %2534 = vmatprep.subr.msk.bf16.mxu1 %vm3163_vm12, %v2838_v61 }
 0x833   :  { %2536 = vmatpush3.bf16.msk.msra.mxu1 %vm3163_vm12, %v2838_v61 }
 0x8f9   :  { %v2240_v31 = vpop.f32.mrb[6].mxu1 }
 0x8fa   :  { %v946_v63 = vadd.f32 %v2240_v31, %v3183_v33  ;;  %v936_v45 = vpop.f32.mrb[7].mxu1 }
 0x8fb   :  { %v945_v47 = vadd.f32 %v936_v45, %v3185_v41 }
 0x8fc   :  { %v3228_v50 = vadd.f32 %v949_v44, %v946_v63 }
 0x8fd   :  { %v3230_v4 = vadd.f32 %v949_v44, %v945_v47 }
 0x8fe   :  { %v960_v15 = vsel %vm95_vm0, %v3228_v50, 0.0 }
 0x8ff   :  { %961 = vadd.xlane.f32.xlu0 %v960_v15  ;;  %v957_v52 = vsel %vm95_vm0, %v3230_v4, 0.0 }
 0x900   :  { %958 = vadd.xlane.f32.xlu1 %v957_v52 }
 0x98c   :  { %v962_v61 = vpop.xlane.xlu0 %961 }
 0x98d   :  { %v964_v54 = vmul.f32 0.03125, %v962_v61  ;;  %v959_v40 = vpop.xlane.xlu1 %958 }
 0x98e   :  { %v963_v53 = vmul.f32 0.03125, %v959_v40 }
 0x98f   :  { %v966_v33 = vsub.f32 %v3228_v50, %v964_v54 }
 0x990   :  { %v965_v41 = vsub.f32 %v3230_v4, %v963_v53 }
 0x991   :  { %v968_v59 = vmul.f32 %v966_v33, %v966_v33 }
 0x992   :  { %v967_v58 = vmul.f32 %v965_v41, %v965_v41 }
 0x993   :  { %v972_v42 = vsel %vm95_vm0, %v968_v59, 0.0 }
 0x994   :  { %973 = vadd.xlane.f32.xlu1 %v972_v42  ;;  %v969_v1 = vsel %vm95_vm0, %v967_v58, 0.0 }
 0x995   :  { %970 = vadd.xlane.f32.xlu0 %v969_v1 }
 0x9ab   :  { %990 = vrot.lane.b32.xlu0 %v3240_v30, %s2834_s1 }
 0xa21   :  { %v974_v13 = vpop.xlane.xlu1 %973 }
 0xa22   :  { %v976_v22 = vmul.f32 0.03125, %v974_v13  ;;  %v971_v14 = vpop.xlane.xlu0 %970 }
 0xa23   :  { %v975_v2 = vmul.f32 0.03125, %v971_v14 }
 0xa24   :  { %v978_v55 = vadd.f32 1e-05, %v976_v22 }
 0xa25   :  { %v977_v49 = vadd.f32 1e-05, %v975_v2 }
 0xa26   :  { %2759 = vrsqrt.f32 %v978_v55  ;;  %v991_v43 = vpop.permute.xlu0 %990 }
 0xa27   :  { %2761 = vrsqrt.f32 %v977_v49 }
 0xa30   :  { %v2760_v48 = vpop.eup %2759 }
 0xa31   :  { %v2762_v16 = vpop.eup %2761  ;;  %v982_v51 = vmul.f32 %v2760_v48, %v966_v33 }
 0xa32   :  { %v981_v39 = vmul.f32 %v2762_v16, %v965_v41 }
 0xa33   :  { %v988_v31 = vmul.f32 %v3240_v30, %v982_v51 }
 0xa34   :  { %v987_v44 = vmul.f32 %v3240_v30, %v981_v39 }
 0xa35   :  { %v994_v45 = vadd.f32 %v991_v43, %v988_v31 }
 0xa36   :  { %v993_v63 = vadd.f32 %v991_v43, %v987_v44 }
 0xa38   :  { %2249 = vmatprep.mubr.msk.f32.mxu0 %vm95_vm0, %v993_v63 }
 0xa39   :  { %2250 = vmatmul.mubr.msk.f32.vlgmr.msra.gmra.mrb[6].mxu0 %vm95_vm0, %v994_v45 }
 0xb0c   :  { %v2251_v47 = vpop.f32.mrb[6].mxu0 }
 0xb0d   :  { %v1071_v15 = vpop.f32.mrb[7].mxu0  ;;  %v1087_v52 = vmul.f32 %v2638_v25, %v2251_v47  ;;  %v1081_v61 = vmul.f32 %v2623_v20, %v2251_v47  ;;  %v1083_v54 = vmul.f32 %v2628_v11, %v2251_v47  ;;  %v1085_v40 = vmul.f32 %v2633_v21, %v2251_v47 }
 0xb0e   :  { %2268 = vmatprep.mubr.msk.f32.mxu0 %vm95_vm0, %v1071_v15  ;;  %v1086_v53 = vmul.f32 %v2637_v29, %v1071_v15  ;;  %v1080_v33 = vmul.f32 %v2622_v26, %v1071_v15  ;;  %v1082_v25 = vmul.f32 %v2627_v27, %v1071_v15  ;;  %v1084_v20 = vmul.f32 %v2632_v28, %v1071_v15 }
 0xb0f   :  { %v1090_v11 = vmul.f32 %v2667_v10, %v1071_v15  ;;  %v1091_v21 = vmul.f32 %v2668_v9, %v2251_v47  ;;  %v1092_v41 = vmul.f32 %v2672_v36, %v1071_v15  ;;  %v1093_v7 = vmul.f32 %v2673_v35, %v2251_v47 }
 0xb10   :  { %v2714_v17 = vpack.i.bf16 %v1087_v52, %v1086_v53  ;;  %v2699_v26 = vpack.i.bf16 %v1081_v61, %v1080_v33  ;;  %v2704_v29 = vpack.i.bf16 %v1083_v54, %v1082_v25  ;;  %v2709_v18 = vpack.i.bf16 %v1085_v40, %v1084_v20 }
 0xb11   :  { %v2724_v27 = vpack.i.bf16 %v1091_v21, %v1090_v11  ;;  %v2729_v59 = vpack.i.bf16 %v1093_v7, %v1092_v41  ;;  %v1088_v19 = vmul.f32 %v2662_v8, %v1071_v15  ;;  %v1089_v28 = vmul.f32 %v2663_v6, %v2251_v47  ;;  %v1421_v21 = vld [vmem:[#allocation2 + $0x1a8] sm:$0xff]  ;;  %v1422_v41 = vld [vmem:[#allocation2 + $0x1b0] sm:$0xff] }
 0xb12   :  { %2715 = vrot.lane.b32.xlu0 %v2714_v17, %s2834_s1  ;;  %2700 = vrot.lane.b32.xlu1 %v2699_v26, %s2834_s1  ;;  %v1094_v5 = vmul.f32 %v2677_v38, %v1071_v15  ;;  %v1095_v9 = vmul.f32 %v2678_v37, %v2251_v47  ;;  %v2553_v7 = vpack.c.bf16 %v1422_v41, %v1421_v21  ;;  %v1423_v17 = vld [vmem:[#allocation2 + $0x1b8] sm:$0xff]  ;;  %v1424_v26 = vld [vmem:[#allocation2 + $0x1c0] sm:$0xff] }
 0xb13   :  { %v2719_v10 = vpack.i.bf16 %v1089_v28, %v1088_v19  ;;  %v1663_v21 = vld [vmem:[#allocation2 + $0x158] sm:$0xff]  ;;  %v1664_v41 = vld [vmem:[#allocation2 + $0x160] sm:$0xff] }
 0xb14   :  { %v2734_v32 = vpack.i.bf16 %v1095_v9, %v1094_v5  ;;  %2554 = vmatprep.subr.bf16.mxu1 %v2553_v7 }
 0xb16   :  { %2705 = vrot.lane.b32.xlu1 %v2704_v29, %s2834_s1  ;;  %v2557_v29 = vpack.c.bf16 %v1424_v26, %v1423_v17  ;;  %v1665_v17 = vld [vmem:[#allocation2 + $0x168] sm:$0xff]  ;;  %v1666_v26 = vld [vmem:[#allocation2 + $0x170] sm:$0xff] }
 0xb1a   :  { %2710 = vrot.lane.b32.xlu1 %v2709_v18, %s2834_s1 }
 0xb1e   :  { %2725 = vrot.lane.b32.xlu1 %v2724_v27, %s2837_s7 }
 0xb84   :  { %v2701_v3 = vpop.permute.xlu1 %2700  ;;  %v2716_v0 = vpop.permute.xlu0 %2715 }
 0xb85   :  { %v2703_v6 = vunpack.i.h.bf16 %v2701_v3  ;;  %v2702_v8 = vunpack.i.l.bf16 %v2701_v3  ;;  %v2718_v56 = vunpack.i.h.bf16 %v2716_v0  ;;  %v2717_v60 = vunpack.i.l.bf16 %v2716_v0 }
 0xb87   :  { %v2497_v35 = vpack.c.bf16 %v2703_v6, %v2702_v8  ;;  %v2515_v12 = vpack.c.bf16 %v2718_v56, %v2717_v60 }
 0xb88   :  { %v2706_v36 = vpop.permute.xlu1 %2705 }
 0xb89   :  { %v2708_v58 = vunpack.i.h.bf16 %v2706_v36  ;;  %v2707_v42 = vunpack.i.l.bf16 %v2706_v36  ;;  %2499 = vmatprep.subr.msk.bf16.mxu0 %vm3038_vm9, %v2497_v35 }
 0xb8a   :  { %2502 = vmatpush3.bf16.xpose.msk.msra.mxu0 %vm3038_vm9, %v2497_v35 }
 0xb8b   :  { %v2503_v34 = vpack.c.bf16 %v2708_v58, %v2707_v42 }
 0xb8c   :  { %v2711_v37 = vpop.permute.xlu1 %2710 }
 0xb8d   :  { %v2713_v38 = vunpack.i.h.bf16 %v2711_v37  ;;  %v2712_v1 = vunpack.i.l.bf16 %v2711_v37  ;;  %2505 = vmatprep.subr.msk.bf16.mxu0 %vm3038_vm9, %v2503_v34 }
 0xb8f   :  { %v2509_v46 = vpack.c.bf16 %v2713_v38, %v2712_v1 }
 0xb90   :  { %v2726_v62 = vpop.permute.xlu1 %2725 }
 0xb91   :  { %v2728_v43 = vunpack.i.h.bf16 %v2726_v62  ;;  %v2727_v31 = vunpack.i.l.bf16 %v2726_v62  ;;  %v1657_v62 = vld [vmem:[#allocation2 + $0x128] sm:$0xff] }
 0xb92   :  { %2508 = vmatpush3.bf16.xpose.msk.msra.mxu0 %vm3038_vm9, %v2503_v34 }
 0xb93   :  { %2511 = vmatprep.subr.msk.bf16.mxu0 %vm3038_vm9, %v2509_v46  ;;  %v2541_v15 = vpack.c.bf16 %v2728_v43, %v2727_v31 }
 0xb9a   :  { %2514 = vmatpush3.bf16.xpose.msk.msra.mxu0 %vm3038_vm9, %v2509_v46 }
 0xb9b   :  { %2517 = vmatprep.subr.msk.bf16.mxu0 %vm3038_vm9, %v2515_v12 }
 0xba2   :  { %2520 = vmatpush3.bf16.xpose.msk.msra.mxu0 %vm3038_vm9, %v2515_v12 }
 0xba9   :  { %2269 = vmatmul.mubr.msk.f32.vlgmr.msra.gmra.mrb[8].mxu0 %vm95_vm0, %v2251_v47 }
 0xc7c   :  { %v2270_v24 = vpop.f32.mrb[8].mxu0 }
 0xc7d   :  { %v1214_v13 = vadd.f32 %v2270_v24, %v3136_v57  ;;  %v1208_v22 = vpop.f32.mrb[9].mxu0  ;;  %v1550_v24 = vld [vmem:[#allocation2 + $0x108] sm:$0xff] }
 0xc7e   :  { %v1209_v14 = vadd.f32 %v1208_v22, %v3138_v23 }
 0xc7f   :  { %v1220_v2 = vsel %vm413_vm3, %v1214_v13, -inf }
 0xc80   :  { %1221 = vmax.xlane.f32.xlu0 %v1220_v2  ;;  %v1217_v55 = vsel %vm413_vm3, %v1209_v14, -inf  ;;  %v1553_v2 = vld [vmem:[#allocation2 + $0x120] sm:$0xff] }
 0xc81   :  { %1218 = vmax.xlane.f32.xlu1 %v1217_v55 }
 0xc92   :  { %2730 = vrot.lane.b32.xlu1 %v2729_v59, %s2837_s7 }
 0xc96   :  { %2720 = vrot.lane.b32.xlu0 %v2719_v10, %s2837_s7 }
 0xc9a   :  { %2735 = vrot.lane.b32.xlu0 %v2734_v32, %s2837_s7  ;;  %v1971_v32 = vld [vmem:[#allocation2 + $0x1c9] ss:$0 sm:$0xff] }
 0xd0d   :  { %v1222_v49 = vpop.xlane.xlu0 %1221 }
 0xd0e   :  { %v1224_v48 = vsub.f32 %v1214_v13, %v1222_v49  ;;  %v1219_v16 = vpop.xlane.xlu1 %1218  ;;  %v1551_v13 = vld [vmem:[#allocation2 + $0x110] sm:$0xff] }
 0xd0f   :  { %v1223_v57 = vsub.f32 %v1209_v14, %v1219_v16  ;;  %v2561_v22 = vpack.c.bf16 %v1551_v13, %v1550_v24  ;;  %v1552_v14 = vld [vmem:[#allocation2 + $0x118] sm:$0xff]  ;;  %v1658_v49 = vld [vmem:[#allocation2 + $0x130] sm:$0xff] }
 0xd10   :  { %v1227_v51 = vmul.f32 1.442695, %v1224_v48  ;;  %v2565_v55 = vpack.c.bf16 %v1553_v2, %v1552_v14  ;;  %v2569_v48 = vpack.c.bf16 %v1658_v49, %v1657_v62 }
 0xd11   :  { %v1225_v39 = vmul.f32 1.442695, %v1223_v57  ;;  %v2721_v23 = vpop.permute.xlu0 %2720 }
 0xd12   :  { %v2723_v44 = vunpack.i.h.bf16 %v2721_v23  ;;  %v2722_v63 = vunpack.i.l.bf16 %v2721_v23  ;;  %v2731_v45 = vpop.permute.xlu1 %2730 }
 0xd13   :  { %2763 = vpow2.f32 %v1225_v39  ;;  %v2733_v52 = vunpack.i.h.bf16 %v2731_v45  ;;  %v2732_v61 = vunpack.i.l.bf16 %v2731_v45 }
 0xd14   :  { %2765 = vpow2.f32 %v1227_v51  ;;  %v2537_v47 = vpack.c.bf16 %v2723_v44, %v2722_v63 }
 0xd15   :  { %v2736_v54 = vpop.permute.xlu0 %2735  ;;  %v2545_v40 = vpack.c.bf16 %v2733_v52, %v2732_v61 }
 0xd16   :  { %2538 = vmatprep.subr.bf16.mxu0 %v2537_v47  ;;  %v2738_v53 = vunpack.i.h.bf16 %v2736_v54  ;;  %v2737_v33 = vunpack.i.l.bf16 %v2736_v54 }
 0xd17   :  { %2540 = vmatpush3.bf16.msra.mxu0 %v2537_v47 }
 0xd18   :  { %2542 = vmatprep.subr.bf16.mxu0 %v2541_v15  ;;  %v2549_v11 = vpack.c.bf16 %v2738_v53, %v2737_v33  ;;  %v1660_v53 = vld [vmem:[#allocation2 + $0x140] sm:$0xff] }
 0xd1b   :  { %2544 = vmatpush3.bf16.msra.mxu0 %v2541_v15 }
 0xd1c   :  { %2546 = vmatprep.subr.bf16.mxu0 %v2545_v40 }
 0xd1d   :  { %v2764_v25 = vpop.eup %2763 }
 0xd1e   :  { %v2766_v20 = vpop.eup %2765  ;;  %2287 = vmatprep.mubr.msk.f32.mxu1 %vm413_vm3, %v2764_v25  ;;  %2306 = vmatprep.mubr.msk.f32.mxu0 %vm413_vm3, %v2764_v25  ;;  %v1661_v25 = vld [vmem:[#allocation2 + $0x148] sm:$0xff] }
 0xd1f   :  { %2288 = vmatmul.mubr.msk.f32.vlgmr.msra.gmra.mrb[8].mxu1 %vm413_vm3, %v2766_v20  ;;  %2548 = vmatpush3.bf16.msra.mxu0 %v2545_v40  ;;  %v1659_v40 = vld [vmem:[#allocation2 + $0x138] sm:$0xff] }
 0xd20   :  { %2550 = vmatprep.subr.bf16.mxu0 %v2549_v11  ;;  %2556 = vmatpush3.bf16.msra.mxu1 %v2553_v7  ;;  %v2573_v33 = vpack.c.bf16 %v1660_v53, %v1659_v40  ;;  %v2581_v7 = vpack.c.bf16 %v1664_v41, %v1663_v21  ;;  %v1798_v40 = vld [vmem:[%s3386_s2 + $0x8] sm:$0xff]  ;;  %v1975_v53 = vld [vmem:[%s3386_s2 + $0x20] ss:$0 sm:$0xff] }
 0xd21   :  { %2558 = vmatprep.subr.bf16.mxu1 %v2557_v29 }
 0xd23   :  { %2552 = vmatpush3.bf16.msra.mxu0 %v2549_v11 }
 0xd24   :  { %2560 = vmatpush3.bf16.msra.mxu1 %v2557_v29  ;;  %2570 = vmatprep.subr.bf16.mxu0 %v2569_v48  ;;  %v2585_v29 = vpack.c.bf16 %v1666_v26, %v1665_v17 }
 0xd25   :  { %2562 = vmatprep.subr.bf16.mxu1 %v2561_v22 }
 0xd26   :  { %2307 = vmatmul.mubr.msk.f32.vlgmr.msra.gmra.mrb[10].mxu0 %vm413_vm3, %v2766_v20  ;;  %v1662_v20 = vld [vmem:[#allocation2 + $0x150] sm:$0xff] }
 0xd27   :  { %2572 = vmatpush3.bf16.msra.mxu0 %v2569_v48  ;;  %v2577_v11 = vpack.c.bf16 %v1662_v20, %v1661_v25  ;;  %v1799_v25 = vld [vmem:[%s3386_s2 + $0x10] sm:$0xff]  ;;  %v1800_v20 = vld [vmem:[%s3386_s2 + $0x18] sm:$0xff] }
 0xd28   :  { %2574 = vmatprep.subr.bf16.mxu0 %v2573_v33 }
 0xd2b   :  { %2576 = vmatpush3.bf16.msra.mxu0 %v2573_v33 }
 0xd2c   :  { %2578 = vmatprep.subr.bf16.mxu0 %v2577_v11 }
 0xd2f   :  { %2580 = vmatpush3.bf16.msra.mxu0 %v2577_v11  ;;  %v2605_v11 = vpack.c.bf16 %v1800_v20, %v1799_v25 }
 0xd30   :  { %2582 = vmatprep.subr.bf16.mxu0 %v2581_v7 }
 0xd33   :  { %2584 = vmatpush3.bf16.msra.mxu0 %v2581_v7 }
 0xd34   :  { %2586 = vmatprep.subr.bf16.mxu0 %v2585_v29 }
 0xd37   :  { %2588 = vmatpush3.bf16.msra.mxu0 %v2585_v29 }
 0xdf2   :  { %v2289_v18 = vpop.f32.mrb[8].mxu1 }
 0xdf3   :  { %2767 = vrcp.f32 %v2289_v18  ;;  %v1301_v27 = vpop.f32.mrb[9].mxu1  ;;  %v1667_v18 = vld [vmem:[#allocation2 + $0x178] sm:$0xff] }
 0xdf4   :  { %2769 = vrcp.f32 %v1301_v27  ;;  %v1668_v27 = vld [vmem:[#allocation2 + $0x180] sm:$0xff] }
 0xdf9   :  { %v2308_v59 = vpop.f32.mrb[10].mxu0 }
 0xdfa   :  { %v1408_v19 = vpop.f32.mrb[11].mxu0 }
 0xdfd   :  { %v2768_v28 = vpop.eup %2767 }
 0xdfe   :  { %v2770_v5 = vpop.eup %2769  ;;  %v1420_v9 = vmul.f32 %v2768_v28, %v2308_v59  ;;  %v2589_v59 = vpack.c.bf16 %v1668_v27, %v1667_v18  ;;  %v1670_v28 = vld [vmem:[#allocation2 + $0x190] sm:$0xff] }
 0xdff   :  { %v1419_v10 = vmul.f32 %v2770_v5, %v1408_v19  ;;  %v1669_v19 = vld [vmem:[#allocation2 + $0x188] sm:$0xff] }
 0xe00   :  { %2590 = vmatprep.subr.bf16.mxu0 %v2589_v59  ;;  %v2593_v5 = vpack.c.bf16 %v1670_v28, %v1669_v19 }
 0xe01   :  { %2317 = vmatprep.mubr.msk.f32.mxu1 %vm95_vm0, %v1419_v10  ;;  %v1672_v10 = vld [vmem:[#allocation2 + $0x1a0] sm:$0xff]  ;;  %2592 = vmatpush3.bf16.msra.mxu0 %v2589_v59 }
 0xe02   :  { %2318 = vmatmul.mubr.msk.f32.vlgmr.msra.gmra.mrb[10].mxu1 %vm95_vm0, %v1420_v9  ;;  %v1671_v9 = vld [vmem:[#allocation2 + $0x198] sm:$0xff]  ;;  %2594 = vmatprep.subr.bf16.mxu0 %v2593_v5 }
 0xe03   :  { %2564 = vmatpush3.bf16.msra.mxu1 %v2561_v22 }
 0xe04   :  { %2566 = vmatprep.subr.bf16.mxu1 %v2565_v55 }
 0xe05   :  { %2596 = vmatpush3.bf16.msra.mxu0 %v2593_v5 }
 0xe07   :  { %2568 = vmatpush3.bf16.msra.mxu1 %v2565_v55 }
 0xed5   :  { %v2319_v3 = vpop.f32.mrb[10].mxu1 }
 0xed6   :  { %v1507_v6 = vadd.f32 %v2319_v3, %v3228_v50  ;;  %v1497_v8 = vpop.f32.mrb[11].mxu1  ;;  %v1972_v3 = vld [vmem:[#allocation2 + $0x1ca] ss:$0 sm:$0xff] }
 0xed7   :  { %v1506_v35 = vadd.f32 %v1497_v8, %v3230_v4 }
 0xed8   :  { %v3318_v36 = vadd.f32 %v1971_v32, %v1507_v6 }
 0xed9   :  { %v3320_v58 = vadd.f32 %v1971_v32, %v1506_v35 }
 0xeda   :  { %v1517_v42 = vsel %vm95_vm0, %v3318_v36, 0.0 }
 0xedb   :  { %1518 = vadd.xlane.f32.xlu0 %v1517_v42  ;;  %v1514_v34 = vsel %vm95_vm0, %v3320_v58, 0.0 }
 0xedc   :  { %1515 = vadd.xlane.f32.xlu1 %v1514_v34 }
 0xeed   :  { %1540 = vrot.lane.b32.xlu1 %v3240_v30, %s2837_s7 }
 0xef1   :  { %1751 = vrot.lane.b32.xlu1 %v1971_v32, %s2834_s1  ;;  %v2597_v32 = vpack.c.bf16 %v1672_v10, %v1671_v9 }
 0xef3   :  { %2598 = vmatprep.subr.bf16.mxu0 %v2597_v32 }
 0xef4   :  { %2600 = vmatpush3.bf16.msra.mxu0 %v2597_v32 }
 0xf68   :  { %v1519_v50 = vpop.xlane.xlu0 %1518 }
 0xf69   :  { %v1521_v37 = vmul.f32 0.03125, %v1519_v50  ;;  %v1516_v4 = vpop.xlane.xlu1 %1515 }
 0xf6a   :  { %v1520_v38 = vmul.f32 0.03125, %v1516_v4 }
 0xf6b   :  { %v1523_v1 = vsub.f32 %v3318_v36, %v1521_v37 }
 0xf6c   :  { %v1522_v46 = vsub.f32 %v3320_v58, %v1520_v38 }
 0xf6d   :  { %v1525_v60 = vmul.f32 %v1523_v1, %v1523_v1  ;;  %v1541_v31 = vpop.permute.xlu1 %1540 }
 0xf6e   :  { %v1524_v0 = vmul.f32 %v1522_v46, %v1522_v46 }
 0xf6f   :  { %v1529_v12 = vsel %vm95_vm0, %v1525_v60, 0.0 }
 0xf70   :  { %v1526_v56 = vsel %vm95_vm0, %v1524_v0, 0.0 }
 0xf71   :  { %1527 = vadd.xlane.f32.xlu0 %v1526_v56  ;;  %v1752_v48 = vpop.permute.xlu1 %1751 }
 0xf75   :  { %1530 = vadd.xlane.f32.xlu0 %v1529_v12 }
 0xf8b   :  { %1545 = vrot.lane.b32.xlu0 %v3240_v30, %s2836_s0 }
 0xffe   :  { %v1528_v16 = vpop.xlane.xlu0 %1527 }
 0xfff   :  { %v1532_v57 = vmul.f32 0.03125, %v1528_v16 }
0x1001   :  { %v1534_v51 = vadd.f32 1e-05, %v1532_v57 }
0x1002   :  { %v1531_v39 = vpop.xlane.xlu0 %1530 }
0x1003   :  { %2771 = vrsqrt.f32 %v1534_v51  ;;  %v1533_v30 = vmul.f32 0.03125, %v1531_v39 }
0x1005   :  { %v1535_v23 = vadd.f32 1e-05, %v1533_v30 }
0x1006   :  { %v1546_v63 = vpop.permute.xlu0 %1545 }
0x1007   :  { %2773 = vrsqrt.f32 %v1535_v23 }
0x100d   :  { %v2772_v43 = vpop.eup %2771 }
0x100e   :  { %v1538_v44 = vmul.f32 %v2772_v43, %v1522_v46 }
0x1010   :  { %v1543_v45 = vmul.f32 %v1541_v31, %v1538_v44 }
0x1011   :  { %v2774_v47 = vpop.eup %2773 }
0x1012   :  { %v1539_v15 = vmul.f32 %v2774_v47, %v1523_v1  ;;  %v1548_v52 = vadd.f32 %v1546_v63, %v1543_v45 }
0x1014   :  { %v1544_v61 = vmul.f32 %v1541_v31, %v1539_v15  ;;  %2328 = vmatprep.mubr.msk.f32.mxu1 %vm95_vm0, %v1548_v52 }
0x1016   :  { %v1549_v54 = vadd.f32 %v1546_v63, %v1544_v61 }
0x1018   :  { %2329 = vmatmul.mubr.msk.f32.vlgmr.msra.gmra.mrb[12].mxu1 %vm95_vm0, %v1549_v54  ;;  %v1797_v54 = vld [vmem:[%s3386_s2] sm:$0xff]  ;;  %s2840_s2 = smov [#allocation5]  }
0x1019   :  { %v2601_v33 = vpack.c.bf16 %v1798_v40, %v1797_v54  ;;  %s1889_s18 = sshll.u32 %s2840_s2, 4  ;;  %s1890_s18 = int_to_ptr.vmem [resolvable:$true] %s1889_s18 }
0x101a   :  { %s2805_s19 = scalar_lea.vmem %s1890_s18, 256  ;;  %p2810_p9 = scmp.lt.s32.totalorder %s1890_s18, %s1890_s18 }
0x101b   :  { %2602 = vmatprep.subr.bf16.mxu1 %v2601_v33  ;;  %p2806_p8 = scmp.ne.s32.totalorder %s1890_s18, %s2805_s19  ;;  %p2811_p10 = scmp.lt.s32.totalorder %s2805_s19, %s2805_s19 }
0x101c   :  { %2604 = vmatpush3.bf16.msra.mxu1 %v2601_v33 }
0x101d   :  { %2606 = vmatprep.subr.bf16.mxu1 %v2605_v11  ;;  %p2812_p11 = por %p2811_p10, %p2810_p9 }
0x101f   :  { %p2813_p12 = pnand %p2812_p11, %p2806_p8 }
0x1020   :  { %2608 = vmatpush3.bf16.msra.mxu1 %v2605_v11 }
0x10eb   :  { %v2330_v6 = vpop.f32.mrb[12].mxu1 }
0x10ec   :  { %v1636_v8 = vadd.f32 %v2330_v6, %v1972_v3  ;;  %v1630_v35 = vpop.f32.mrb[13].mxu1 }
0x10ed   :  { %v1631_v42 = vadd.f32 %v1972_v3, %v1630_v35 }
0x10ee   :  { %v1642_v34 = vmul.f32 0.044715, %v1636_v8  ;;  %v1640_v2 = vmul.f32 0.5, %v1636_v8 }
0x10ef   :  { %v1641_v50 = vmul.f32 0.044715, %v1631_v42  ;;  %v1639_v22 = vmul.f32 0.5, %v1631_v42 }
0x10f0   :  { %v1644_v37 = vmul.f32 %v1642_v34, %v1636_v8 }
0x10f1   :  { %v1643_v4 = vmul.f32 %v1641_v50, %v1631_v42 }
0x10f2   :  { %v1646_v38 = vmul.f32 %v1644_v37, %v1636_v8 }
0x10f3   :  { %v1645_v1 = vmul.f32 %v1643_v4, %v1631_v42 }
0x10f4   :  { %v1648_v46 = vadd.f32 %v1646_v38, %v1636_v8 }
0x10f5   :  { %v1647_v0 = vadd.f32 %v1645_v1, %v1631_v42 }
0x10f6   :  { %v1650_v56 = vmul.f32 0.7978846, %v1648_v46 }
0x10f7   :  { %v1649_v60 = vmul.f32 0.7978846, %v1647_v0 }
0x10f8   :  { %2775 = vtanh.f32 %v1650_v56 }
0x10f9   :  { %2777 = vtanh.f32 %v1649_v60 }
0x1102   :  { %v2776_v12 = vpop.eup %2775 }
0x1103   :  { %v2778_v24 = vpop.eup %2777  ;;  %v1654_v13 = vadd.f32 1.0, %v2776_v12 }
0x1104   :  { %v1653_v14 = vadd.f32 1.0, %v2778_v24 }
0x1105   :  { %v1656_v62 = vmul.f32 %v1654_v13, %v1640_v2 }
0x1106   :  { %v1655_v55 = vmul.f32 %v1653_v14, %v1639_v22 }
0x1108   :  { %2363 = vmatprep.mubr.f32.mxu0 %v1655_v55 }
0x1109   :  { %2364 = vmatmul.mubr.f32.vlgmr.msra.gmra.mrb[12].mxu0 %v1656_v62 }
0x11dc   :  { %v2365_v49 = vpop.f32.mrb[12].mxu0 }
0x11dd   :  { %v1749_v16 = vadd.f32 %v2365_v49, %v3318_v36  ;;  %v1739_v57 = vpop.f32.mrb[13].mxu0 }
0x11de   :  { %v1748_v51 = vadd.f32 %v1739_v57, %v3320_v58 }
0x11df   :  { %v1755_v39 = vadd.f32 %v1752_v48, %v1749_v16 }
0x11e0   :  { %v1754_v30 = vadd.f32 %v1752_v48, %v1748_v51 }
0x11e1   :  { %v1760_v23 = vsel %vm95_vm0, %v1755_v39, 0.0 }
0x11e2   :  { %1761 = vadd.xlane.f32.xlu0 %v1760_v23  ;;  %v1757_v43 = vsel %vm95_vm0, %v1754_v30, 0.0 }
0x11e3   :  { %1758 = vadd.xlane.f32.xlu1 %v1757_v43 }
0x126f   :  { %v1762_v31 = vpop.xlane.xlu0 %1761 }
0x1270   :  { %v1764_v44 = vmul.f32 0.03125, %v1762_v31  ;;  %v1759_v63 = vpop.xlane.xlu1 %1758 }
0x1271   :  { %v1763_v45 = vmul.f32 0.03125, %v1759_v63 }
0x1272   :  { %v1766_v47 = vsub.f32 %v1755_v39, %v1764_v44 }
0x1273   :  { %v1765_v15 = vsub.f32 %v1754_v30, %v1763_v45 }
0x1274   :  { %v1768_v52 = vmul.f32 %v1766_v47, %v1766_v47 }
0x1275   :  { %v1767_v61 = vmul.f32 %v1765_v15, %v1765_v15 }
0x1276   :  { %v1772_v36 = vsel %vm95_vm0, %v1768_v52, 0.0 }
0x1277   :  { %1773 = vadd.xlane.f32.xlu1 %v1772_v36  ;;  %v1769_v58 = vsel %vm95_vm0, %v1767_v61, 0.0 }
0x1278   :  { %1770 = vadd.xlane.f32.xlu0 %v1769_v58 }
0x128e   :  { %1790 = vrot.lane.b32.xlu0 %v1975_v53, %s2834_s1 }
0x1304   :  { %v1774_v21 = vpop.xlane.xlu1 %1773 }
0x1305   :  { %v1776_v41 = vmul.f32 0.03125, %v1774_v21  ;;  %v1771_v7 = vpop.xlane.xlu0 %1770 }
0x1306   :  { %v1775_v17 = vmul.f32 0.03125, %v1771_v7 }
0x1307   :  { %v1778_v26 = vadd.f32 1e-05, %v1776_v41 }
0x1308   :  { %v1777_v29 = vadd.f32 1e-05, %v1775_v17 }
0x1309   :  { %2779 = vrsqrt.f32 %v1778_v26  ;;  %v1791_v28 = vpop.permute.xlu0 %1790 }
0x130a   :  { %2781 = vrsqrt.f32 %v1777_v29 }
0x1313   :  { %v2780_v18 = vpop.eup %2779 }
0x1314   :  { %v2782_v27 = vpop.eup %2781  ;;  %v1782_v59 = vmul.f32 %v2780_v18, %v1766_v47 }
0x1315   :  { %v1781_v19 = vmul.f32 %v2782_v27, %v1765_v15 }
0x1316   :  { %v1788_v5 = vmul.f32 %v1975_v53, %v1782_v59 }
0x1317   :  { %v1787_v9 = vmul.f32 %v1975_v53, %v1781_v19 }
0x1318   :  { %v1794_v10 = vadd.f32 %v1791_v28, %v1788_v5 }
0x1319   :  { %v1793_v32 = vadd.f32 %v1791_v28, %v1787_v9 }
0x131a   :  { %1796 = vst.msk [vmem:[#allocation5 + $0x8] sm:$0xff] %vm95_vm0, %v1794_v10 }
0x131b   :  { %1795 = vst.msk [vmem:[#allocation5] sm:$0xff] %vm95_vm0, %v1793_v32  ;;  %2374 = vmatprep.mubr.msk.f32.mxu1 %vm95_vm0, %v1793_v32 }
0x131c   :  { %2375 = vmatmul.mubr.msk.f32.vlgmr.msra.gmra.mrb[14].mxu1 %vm95_vm0, %v1794_v10 }
0x131d   :  { %2816 = shalt.err (!%p2813_p12)
}
0x131e   :  { %s2817_s22 = scalar_lea.hbm %s3387_s3, 256 }
0x131f   :  { %p2818_p13 = scmp.ne.s32.totalorder %s3387_s3, %s2817_s22  ;;  %p2821_p0 = scmp.lt.u32.totalorder %s2817_s22, %s3387_s3 }
0x1321   :  { %p2823_p1 = pnand %p2821_p0, %p2818_p13 }
0x1323   :  { %2826 = shalt.err (!%p2823_p1)
}
0x1324   :  { %1895 = dma.vmem_to_hbm [thread:$0]  %s1890_s18, 256, %s3387_s3, [#allocation4], %s2832_s25, %s2832_s25, %s2833_s26  }
0x13ef   :  { %v2376_v3 = vpop.f32.mrb[14].mxu1 }
0x13f0   :  { %1883 = vst [vmem:[%s3388_s4 + $0x8] sm:$0xff] %v2376_v3  ;;  %v1873_v6 = vpop.f32.mrb[15].mxu1 }
0x13f1   :  { %1882 = vst [vmem:[%s3388_s4] sm:$0xff] %v1873_v6 }
0x13f2   :  { %2829 = dma.done.wait [#allocation4], 256  }
0x13f3   :  { %2830 = vsyncadd [#allocation4], 4294967040 }
0x13f4   :  { %1903 = vsyncpa [#allocation3], 1 }
0x13f5   :  { %1904 = vsyncpa [#allocation4], 1 }

</bundles_post_ra>
